<compile_context>
chip_gen: v7x
topology: tpu7x:2x2x1
jax: 0.10.0
libtpu: 0.0.40
codegen_flags: <defaults>
</compile_context>

<pallas_src>
import functools

import jax
import jax.numpy as jnp
from jax import lax
from jax.experimental import pallas as pl
from jax.experimental.pallas import tpu as pltpu


def _conv3d_im2col_kernel(*refs, K, TD, H, W, C_out, fold_w):
    # refs = [x_main, x_halo_0 .. x_halo_{K-2}, w, bias, out]
    #   x_main   : (TD, Hp*W, K*C_in)    bf16  padded depth rows t*TD .. t*TD+TD-1
    #   x_halo_i : (Hp*W, K*C_in)        bf16  padded depth row  t*TD+TD+i
    #   w        : (K*K, K*C_in, C_out)  bf16  dense im2col weights per (kd, kh)
    #   bias     : (1, C_out)            f32
    #   out      : (TD, H, W*C_out) if fold_w else (TD, H*W, C_out), f32
    x_main = refs[0]
    x_halo = refs[1:K]
    w_ref, b_ref, o_ref = refs[K], refs[K + 1], refs[K + 2]
    HW = H * W

    def load_tap(r, lo):
        # Padded depth row r of this tile, rows [lo, lo+HW) -> (H*W, K*C_in).
        if r < TD:
            return x_main[r, lo:lo + HW, :]
        return x_halo[r - TD][lo:lo + HW, :]

    for td in range(TD):
        # Register-resident f32 accumulator, initialised with the bias;
        # K*K chained dots, a single store at the end (no o_ref RMW).
        acc = jnp.broadcast_to(b_ref[...], (HW, C_out))
        for kd in range(K):
            r = td + kd                                   # static
            for kh in range(K):
                lhs = load_tap(r, kh * W)                 # (H*W, K*C_in)
                acc = acc + jnp.dot(lhs, w_ref[kd * K + kh],
                                    preferred_element_type=jnp.float32)
        if fold_w:
            # Fold W into the lane axis so the store is lane-dense:
            # (H*W, C_out) -> (H, W, C_out) (leading-dim split, layout-cheap)
            # -> lane-concat over w -> (H, W*C_out).
            acc3 = acc.reshape(H, W, C_out)
            o_ref[td] = jnp.concatenate(
                [acc3[:, w, :] for w in range(W)], axis=-1)
        else:
            o_ref[td] = acc


def _pick_depth_tile(D, K, row_in_bytes, row_out_bytes, budget_bytes, cap=8):
    """Largest TD | D (TD <= cap) whose double-buffered working set
    ((TD+K-1) input rows + TD output rows) fits the VMEM budget."""
    td = 1
    for cand in range(1, min(D, cap) + 1):
        if D % cand:
            continue
        need = 2 * ((cand + K - 1) * row_in_bytes + cand * row_out_bytes)
        if need <= budget_bytes:
            td = cand
    return td


def my_conv3d(x_ncdhw, weight_oidhw, bias, kernel_size,
              *, compute_dtype=jnp.bfloat16,
              vmem_budget_bytes=36 * 1024 * 1024):
    """x: (N, C_in, D, H, W); weight: (C_out, C_in, k, k, k); bias: (C_out,)."""
    N, C_in, D, H, W = x_ncdhw.shape
    C_out = weight_oidhw.shape[0]
    K = int(kernel_size)
    assert K % 2 == 1, "MyConv3d assumes an odd kernel_size"
    p = (K - 1) // 2
    Dp, Hp, Wp = D + 2 * p, H + 2 * p, W + 2 * p
    KC = K * C_in                       # dense contraction depth per (kd, kh)
    HW = H * W
    fold_w = C_out < 128                # lane-dense stores when C_out is narrow
    out_tail = (H, W * C_out) if fold_w else (HW, C_out)

    itemsize = jnp.dtype(compute_dtype).itemsize
    row_in_bytes = Hp * W * KC * itemsize
    row_out_bytes = HW * C_out * 4
    TD = _pick_depth_tile(D, K, row_in_bytes, row_out_bytes, vmem_budget_bytes)
    assert D % TD == 0

    # ---- wrapper glue (plain JAX) ------------------------------------------
    # Channels-last, cast to bf16 *before* padding (halves pad HBM traffic);
    # replicate-pad D (== F.pad mode='replicate'), zero-pad H/W
    # (== Conv3d padding=(0, p, p)).
    # TODO(synk): keeping activations channels-last between layers would drop
    # the NCDHW<->NDHWC transposes entirely.
    x = jnp.transpose(x_ncdhw, (0, 2, 3, 4, 1)).astype(compute_dtype)  # N,D,H,W,C
    x = jnp.pad(x, ((0, 0), (p, p), (0, 0), (0, 0), (0, 0)), mode='edge')
    x = jnp.pad(x, ((0, 0), (0, 0), (p, p), (p, p), (0, 0)))           # N,Dp,Hp,Wp,C

    # kw-im2col with a lane-dense layout:
    #   x_col[n, dp, hp*W + w, kw*C_in + ci] = x_pad[n, dp, hp, w + kw, ci]
    cols = [x[:, :, :, kw:kw + W, :] for kw in range(K)]   # K x (N,Dp,Hp,W,C)
    x_col = jnp.stack(cols, axis=4).reshape(N, Dp, Hp * W, KC)

    # Dense per-(kd,kh) weights: w2[kd*K+kh, kw*C_in+ci, co] = W[co,ci,kd,kh,kw]
    w2 = jnp.transpose(weight_oidhw, (2, 3, 4, 1, 0))      # (kd,kh,kw,ci,co)
    w2 = w2.reshape(K * K, KC, C_out).astype(compute_dtype)

    b_row = bias.astype(jnp.float32).reshape(1, C_out)

    kernel = functools.partial(_conv3d_im2col_kernel, K=K, TD=TD, H=H, W=W,
                               C_out=C_out, fold_w=fold_w)

    # Main block: TD padded depth rows; halo: the next K-1 rows, expressed as
    # K-1 extra views of the same array with shifted index_maps, so input HBM
    # traffic is (TD+K-1)/TD instead of Kx.  Weights/bias use constant index
    # maps -> fetched once and kept resident by the pipeline.  If D-tiled DMA
    # ever shows up exposed, bump the x specs with pipeline_mode=pl.Buffered(3).
    main_spec = pl.BlockSpec((pl.Squeezed(), TD, Hp * W, KC),
                             lambda n, t: (n, t, 0, 0))
    halo_specs = [
        pl.BlockSpec((pl.Squeezed(), pl.Squeezed(), Hp * W, KC),
                     lambda n, t, i=i, TD=TD: (n, t * TD + TD + i, 0, 0))
        for i in range(K - 1)
    ]
    w_spec = pl.BlockSpec((K * K, KC, C_out), lambda n, t: (0, 0, 0))
    b_spec = pl.BlockSpec((1, C_out), lambda n, t: (0, 0))
    out_spec = pl.BlockSpec((pl.Squeezed(), TD) + out_tail,
                            lambda n, t: (n, t, 0, 0))

    grid = (N, D // TD)

    # Issued FLOPs now equal useful FLOPs (dense contraction); bytes include
    # the (TD+K-1)/TD halo re-read of the im2col'd input.
    flops = 2 * N * D * H * W * (K ** 3) * C_in * C_out
    in_rows = N * (D + (K - 1) * (D // TD))
    bytes_accessed = int(in_rows * row_in_bytes
                         + w2.size * w2.dtype.itemsize
                         + b_row.size * 4
                         + N * D * HW * C_out * 4)

    out_flat = pl.pallas_call(
        kernel,
        out_shape=jax.ShapeDtypeStruct((N, D) + out_tail, jnp.float32),
        grid=grid,
        in_specs=[main_spec] + halo_specs + [w_spec, b_spec],
        out_specs=out_spec,
        compiler_params=pltpu.CompilerParams(
            dimension_semantics=("parallel", "parallel"),
            vmem_limit_bytes=48 * 1024 * 1024),     # < v7x's 64 MiB physical
        cost_estimate=pl.CostEstimate(flops=flops, transcendentals=0,
                                      bytes_accessed=bytes_accessed),
    )(*([x_col] * K), w2, b_row)

    out = out_flat.reshape(N, D, H, W, C_out)
    return jnp.transpose(out, (0, 4, 1, 2, 3))               # back to NCDHW


def _reference(x_ncdhw, weight, bias, K):
    # Pure-JAX reference (shifted einsums in f32) mirroring the PyTorch module:
    # replicate-pad D, zero-pad H/W, conv, add bias.
    p = (K - 1) // 2
    xp = jnp.pad(x_ncdhw, ((0, 0), (0, 0), (p, p), (0, 0), (0, 0)), mode='edge')
    xp = jnp.pad(xp, ((0, 0), (0, 0), (0, 0), (p, p), (p, p)))
    N, C_in, Dp, Hp, Wp = xp.shape
    D, H, W = Dp - 2 * p, Hp - 2 * p, Wp - 2 * p
    C_out = weight.shape[0]
    out = jnp.zeros((N, C_out, D, H, W), jnp.float32)
    for kd in range(K):
        for kh in range(K):
            for kw in range(K):
                out = out + jnp.einsum(
                    'ncdhw,oc->nodhw',
                    xp[:, :, kd:kd + D, kh:kh + H, kw:kw + W],
                    weight[:, :, kd, kh, kw],
                    precision=lax.Precision.HIGHEST)
    return out + bias[None, :, None, None, None]


if __name__ == "__main__":
    key = jax.random.PRNGKey(0)
    k1, k2, k3 = jax.random.split(key, 3)

    N, C_in, C_out, K = 2, 4, 8, 3
    D, H, W = 4, 8, 8

    x = jax.random.normal(k1, (N, C_in, D, H, W), dtype=jnp.float32)

    # Deterministic PyTorch-style Conv3d init (uniform with fan-in bound).
    fan_in = C_in * K * K * K
    bound = 1.0 / (fan_in ** 0.5)
    weight = jax.random.uniform(k2, (C_out, C_in, K, K, K), jnp.float32,
                                minval=-bound, maxval=bound)
    bias = jax.random.uniform(k3, (C_out,), jnp.float32,
                              minval=-bound, maxval=bound)

    out = my_conv3d(x, weight, bias, K)
    jax.block_until_ready(out)

    # Kernel computes bf16 x bf16 -> f32 on the MXU, so compare against a
    # reference run on the same bf16-rounded operands (f32 accumulation).
    x_r = x.astype(jnp.bfloat16).astype(jnp.float32)
    w_r = weight.astype(jnp.bfloat16).astype(jnp.float32)
    ref = _reference(x_r, w_r, bias, K)

    assert out.shape == (N, C_out, D, H, W), out.shape
    max_err = float(jnp.max(jnp.abs(out - ref)))
    assert max_err < 1e-2, max_err

    print("KERNEL_OK")
</pallas_src>

<mosaic_0001>
module attributes {stable_mosaic.version = 11 : i64} {
  func.func @_conv3d_im2col_kernel(%arg0: i32, %arg1: i32, %arg2: memref<1x4x80x12xbf16, #tpu.memory_space<vmem>>, %arg3: memref<1x1x80x12xbf16, #tpu.memory_space<vmem>>, %arg4: memref<1x1x80x12xbf16, #tpu.memory_space<vmem>>, %arg5: memref<9x12x8xbf16, #tpu.memory_space<vmem>>, %arg6: memref<1x8xf32, #tpu.memory_space<vmem>>, %arg7: memref<1x4x8x64xf32, #tpu.memory_space<vmem>>) attributes {dimension_semantics = [#tpu.dimension_semantics<parallel>, #tpu.dimension_semantics<parallel>], iteration_bounds = array<i64: 2, 1>, scalar_prefetch = 0 : i64, scratch_operands = 0 : i64, tpu.core_type = #tpu.core_type<tc>, window_params = [{transform_indices = @transform_0, window_bounds = array<i64: 1, 4, 80, 12>}, {transform_indices = @transform_1, window_bounds = array<i64: 1, 1, 80, 12>}, {transform_indices = @transform_2, window_bounds = array<i64: 1, 1, 80, 12>}, {pipeline_mode = #tpu.pipeline_mode<synchronous>, transform_indices = @transform_3, window_bounds = array<i64: 9, 12, 8>}, {pipeline_mode = #tpu.pipeline_mode<synchronous>, transform_indices = @transform_4, window_bounds = array<i64: 1, 8>}, {transform_indices = @transform_5, window_bounds = array<i64: 1, 4, 8, 64>}]} {
    %c0 = arith.constant 0 : index
    %c0_0 = arith.constant 0 : index
    %0 = vector.load %arg6[%c0, %c0_0] : memref<1x8xf32, #tpu.memory_space<vmem>>, vector<1x8xf32>
    %1 = vector.shape_cast %0 : vector<1x8xf32> to vector<1x8xf32>
    %2 = vector.broadcast %1 : vector<1x8xf32> to vector<64x8xf32>
    %c0_1 = arith.constant 0 : index
    %c0_2 = arith.constant 0 : index
    %c0_3 = arith.constant 0 : index
    %c0_4 = arith.constant 0 : index
    %3 = vector.load %arg2[%c0_1, %c0_2, %c0_3, %c0_4] : memref<1x4x80x12xbf16, #tpu.memory_space<vmem>>, vector<1x1x64x12xbf16>
    %4 = vector.shape_cast %3 : vector<1x1x64x12xbf16> to vector<64x12xbf16>
    %c0_5 = arith.constant 0 : index
    %c0_6 = arith.constant 0 : index
    %c0_7 = arith.constant 0 : index
    %5 = vector.load %arg5[%c0_5, %c0_6, %c0_7] : memref<9x12x8xbf16, #tpu.memory_space<vmem>>, vector<1x12x8xbf16>
    %6 = vector.shape_cast %5 : vector<1x12x8xbf16> to vector<12x8xbf16>
    %cst = arith.constant dense<0.000000e+00> : vector<64x8xf32>
    %7 = tpu.matmul %4, %6, %cst {dimension_numbers = #tpu.dot_dimension_numbers<[1], [0], [0], [1], [0, 0, 1, 1], [], []>} : vector<64x12xbf16>, vector<12x8xbf16>, vector<64x8xf32> -> vector<64x8xf32>
    %8 = arith.addf %2, %7 : vector<64x8xf32>
    %c0_8 = arith.constant 0 : index
    %c0_9 = arith.constant 0 : index
    %c8 = arith.constant 8 : index
    %c0_10 = arith.constant 0 : index
    %9 = vector.load %arg2[%c0_8, %c0_9, %c8, %c0_10] : memref<1x4x80x12xbf16, #tpu.memory_space<vmem>>, vector<1x1x64x12xbf16>
    %10 = vector.shape_cast %9 : vector<1x1x64x12xbf16> to vector<64x12xbf16>
    %c1 = arith.constant 1 : index
    %c0_11 = arith.constant 0 : index
    %c0_12 = arith.constant 0 : index
    %11 = vector.load %arg5[%c1, %c0_11, %c0_12] : memref<9x12x8xbf16, #tpu.memory_space<vmem>>, vector<1x12x8xbf16>
    %12 = vector.shape_cast %11 : vector<1x12x8xbf16> to vector<12x8xbf16>
    %cst_13 = arith.constant dense<0.000000e+00> : vector<64x8xf32>
    %13 = tpu.matmul %10, %12, %cst_13 {dimension_numbers = #tpu.dot_dimension_numbers<[1], [0], [0], [1], [0, 0, 1, 1], [], []>} : vector<64x12xbf16>, vector<12x8xbf16>, vector<64x8xf32> -> vector<64x8xf32>
    %14 = arith.addf %8, %13 : vector<64x8xf32>
    %c0_14 = arith.constant 0 : index
    %c0_15 = arith.constant 0 : index
    %c16 = arith.constant 16 : index
    %c0_16 = arith.constant 0 : index
    %15 = vector.load %arg2[%c0_14, %c0_15, %c16, %c0_16] : memref<1x4x80x12xbf16, #tpu.memory_space<vmem>>, vector<1x1x64x12xbf16>
    %16 = vector.shape_cast %15 : vector<1x1x64x12xbf16> to vector<64x12xbf16>
    %c2 = arith.constant 2 : index
    %c0_17 = arith.constant 0 : index
    %c0_18 = arith.constant 0 : index
    %17 = vector.load %arg5[%c2, %c0_17, %c0_18] : memref<9x12x8xbf16, #tpu.memory_space<vmem>>, vector<1x12x8xbf16>
    %18 = vector.shape_cast %17 : vector<1x12x8xbf16> to vector<12x8xbf16>
    %cst_19 = arith.constant dense<0.000000e+00> : vector<64x8xf32>
    %19 = tpu.matmul %16, %18, %cst_19 {dimension_numbers = #tpu.dot_dimension_numbers<[1], [0], [0], [1], [0, 0, 1, 1], [], []>} : vector<64x12xbf16>, vector<12x8xbf16>, vector<64x8xf32> -> vector<64x8xf32>
    %20 = arith.addf %14, %19 : vector<64x8xf32>
    %c0_20 = arith.constant 0 : index
    %c1_21 = arith.constant 1 : index
    %c0_22 = arith.constant 0 : index
    %c0_23 = arith.constant 0 : index
    %21 = vector.load %arg2[%c0_20, %c1_21, %c0_22, %c0_23] : memref<1x4x80x12xbf16, #tpu.memory_space<vmem>>, vector<1x1x64x12xbf16>
    %22 = vector.shape_cast %21 : vector<1x1x64x12xbf16> to vector<64x12xbf16>
    %c3 = arith.constant 3 : index
    %c0_24 = arith.constant 0 : index
    %c0_25 = arith.constant 0 : index
    %23 = vector.load %arg5[%c3, %c0_24, %c0_25] : memref<9x12x8xbf16, #tpu.memory_space<vmem>>, vector<1x12x8xbf16>
    %24 = vector.shape_cast %23 : vector<1x12x8xbf16> to vector<12x8xbf16>
    %cst_26 = arith.constant dense<0.000000e+00> : vector<64x8xf32>
    %25 = tpu.matmul %22, %24, %cst_26 {dimension_numbers = #tpu.dot_dimension_numbers<[1], [0], [0], [1], [0, 0, 1, 1], [], []>} : vector<64x12xbf16>, vector<12x8xbf16>, vector<64x8xf32> -> vector<64x8xf32>
    %26 = arith.addf %20, %25 : vector<64x8xf32>
    %c0_27 = arith.constant 0 : index
    %c1_28 = arith.constant 1 : index
    %c8_29 = arith.constant 8 : index
    %c0_30 = arith.constant 0 : index
    %27 = vector.load %arg2[%c0_27, %c1_28, %c8_29, %c0_30] : memref<1x4x80x12xbf16, #tpu.memory_space<vmem>>, vector<1x1x64x12xbf16>
    %28 = vector.shape_cast %27 : vector<1x1x64x12xbf16> to vector<64x12xbf16>
    %c4 = arith.constant 4 : index
    %c0_31 = arith.constant 0 : index
    %c0_32 = arith.constant 0 : index
    %29 = vector.load %arg5[%c4, %c0_31, %c0_32] : memref<9x12x8xbf16, #tpu.memory_space<vmem>>, vector<1x12x8xbf16>
    %30 = vector.shape_cast %29 : vector<1x12x8xbf16> to vector<12x8xbf16>
    %cst_33 = arith.constant dense<0.000000e+00> : vector<64x8xf32>
    %31 = tpu.matmul %28, %30, %cst_33 {dimension_numbers = #tpu.dot_dimension_numbers<[1], [0], [0], [1], [0, 0, 1, 1], [], []>} : vector<64x12xbf16>, vector<12x8xbf16>, vector<64x8xf32> -> vector<64x8xf32>
    %32 = arith.addf %26, %31 : vector<64x8xf32>
    %c0_34 = arith.constant 0 : index
    %c1_35 = arith.constant 1 : index
    %c16_36 = arith.constant 16 : index
    %c0_37 = arith.constant 0 : index
    %33 = vector.load %arg2[%c0_34, %c1_35, %c16_36, %c0_37] : memref<1x4x80x12xbf16, #tpu.memory_space<vmem>>, vector<1x1x64x12xbf16>
    %34 = vector.shape_cast %33 : vector<1x1x64x12xbf16> to vector<64x12xbf16>
    %c5 = arith.constant 5 : index
    %c0_38 = arith.constant 0 : index
    %c0_39 = arith.constant 0 : index
    %35 = vector.load %arg5[%c5, %c0_38, %c0_39] : memref<9x12x8xbf16, #tpu.memory_space<vmem>>, vector<1x12x8xbf16>
    %36 = vector.shape_cast %35 : vector<1x12x8xbf16> to vector<12x8xbf16>
    %cst_40 = arith.constant dense<0.000000e+00> : vector<64x8xf32>
    %37 = tpu.matmul %34, %36, %cst_40 {dimension_numbers = #tpu.dot_dimension_numbers<[1], [0], [0], [1], [0, 0, 1, 1], [], []>} : vector<64x12xbf16>, vector<12x8xbf16>, vector<64x8xf32> -> vector<64x8xf32>
    %38 = arith.addf %32, %37 : vector<64x8xf32>
    %c0_41 = arith.constant 0 : index
    %c2_42 = arith.constant 2 : index
    %c0_43 = arith.constant 0 : index
    %c0_44 = arith.constant 0 : index
    %39 = vector.load %arg2[%c0_41, %c2_42, %c0_43, %c0_44] : memref<1x4x80x12xbf16, #tpu.memory_space<vmem>>, vector<1x1x64x12xbf16>
    %40 = vector.shape_cast %39 : vector<1x1x64x12xbf16> to vector<64x12xbf16>
    %c6 = arith.constant 6 : index
    %c0_45 = arith.constant 0 : index
    %c0_46 = arith.constant 0 : index
    %41 = vector.load %arg5[%c6, %c0_45, %c0_46] : memref<9x12x8xbf16, #tpu.memory_space<vmem>>, vector<1x12x8xbf16>
    %42 = vector.shape_cast %41 : vector<1x12x8xbf16> to vector<12x8xbf16>
    %cst_47 = arith.constant dense<0.000000e+00> : vector<64x8xf32>
    %43 = tpu.matmul %40, %42, %cst_47 {dimension_numbers = #tpu.dot_dimension_numbers<[1], [0], [0], [1], [0, 0, 1, 1], [], []>} : vector<64x12xbf16>, vector<12x8xbf16>, vector<64x8xf32> -> vector<64x8xf32>
    %44 = arith.addf %38, %43 : vector<64x8xf32>
    %c0_48 = arith.constant 0 : index
    %c2_49 = arith.constant 2 : index
    %c8_50 = arith.constant 8 : index
    %c0_51 = arith.constant 0 : index
    %45 = vector.load %arg2[%c0_48, %c2_49, %c8_50, %c0_51] : memref<1x4x80x12xbf16, #tpu.memory_space<vmem>>, vector<1x1x64x12xbf16>
    %46 = vector.shape_cast %45 : vector<1x1x64x12xbf16> to vector<64x12xbf16>
    %c7 = arith.constant 7 : index
    %c0_52 = arith.constant 0 : index
    %c0_53 = arith.constant 0 : index
    %47 = vector.load %arg5[%c7, %c0_52, %c0_53] : memref<9x12x8xbf16, #tpu.memory_space<vmem>>, vector<1x12x8xbf16>
    %48 = vector.shape_cast %47 : vector<1x12x8xbf16> to vector<12x8xbf16>
    %cst_54 = arith.constant dense<0.000000e+00> : vector<64x8xf32>
    %49 = tpu.matmul %46, %48, %cst_54 {dimension_numbers = #tpu.dot_dimension_numbers<[1], [0], [0], [1], [0, 0, 1, 1], [], []>} : vector<64x12xbf16>, vector<12x8xbf16>, vector<64x8xf32> -> vector<64x8xf32>
    %50 = arith.addf %44, %49 : vector<64x8xf32>
    %c0_55 = arith.constant 0 : index
    %c2_56 = arith.constant 2 : index
    %c16_57 = arith.constant 16 : index
    %c0_58 = arith.constant 0 : index
    %51 = vector.load %arg2[%c0_55, %c2_56, %c16_57, %c0_58] : memref<1x4x80x12xbf16, #tpu.memory_space<vmem>>, vector<1x1x64x12xbf16>
    %52 = vector.shape_cast %51 : vector<1x1x64x12xbf16> to vector<64x12xbf16>
    %c8_59 = arith.constant 8 : index
    %c0_60 = arith.constant 0 : index
    %c0_61 = arith.constant 0 : index
    %53 = vector.load %arg5[%c8_59, %c0_60, %c0_61] : memref<9x12x8xbf16, #tpu.memory_space<vmem>>, vector<1x12x8xbf16>
    %54 = vector.shape_cast %53 : vector<1x12x8xbf16> to vector<12x8xbf16>
    %cst_62 = arith.constant dense<0.000000e+00> : vector<64x8xf32>
    %55 = tpu.matmul %52, %54, %cst_62 {dimension_numbers = #tpu.dot_dimension_numbers<[1], [0], [0], [1], [0, 0, 1, 1], [], []>} : vector<64x12xbf16>, vector<12x8xbf16>, vector<64x8xf32> -> vector<64x8xf32>
    %56 = arith.addf %50, %55 : vector<64x8xf32>
    %57 = vector.shape_cast %56 : vector<64x8xf32> to vector<8x8x8xf32>
    %58 = vector.extract_strided_slice %57 {offsets = [0, 0, 0], sizes = [8, 1, 8], strides = [1, 1, 1]} : vector<8x8x8xf32> to vector<8x1x8xf32>
    %59 = vector.shape_cast %58 : vector<8x1x8xf32> to vector<8x8xf32>
    %60 = vector.extract_strided_slice %57 {offsets = [0, 1, 0], sizes = [8, 1, 8], strides = [1, 1, 1]} : vector<8x8x8xf32> to vector<8x1x8xf32>
    %61 = vector.shape_cast %60 : vector<8x1x8xf32> to vector<8x8xf32>
    %62 = vector.extract_strided_slice %57 {offsets = [0, 2, 0], sizes = [8, 1, 8], strides = [1, 1, 1]} : vector<8x8x8xf32> to vector<8x1x8xf32>
    %63 = vector.shape_cast %62 : vector<8x1x8xf32> to vector<8x8xf32>
    %64 = vector.extract_strided_slice %57 {offsets = [0, 3, 0], sizes = [8, 1, 8], strides = [1, 1, 1]} : vector<8x8x8xf32> to vector<8x1x8xf32>
    %65 = vector.shape_cast %64 : vector<8x1x8xf32> to vector<8x8xf32>
    %66 = vector.extract_strided_slice %57 {offsets = [0, 4, 0], sizes = [8, 1, 8], strides = [1, 1, 1]} : vector<8x8x8xf32> to vector<8x1x8xf32>
    %67 = vector.shape_cast %66 : vector<8x1x8xf32> to vector<8x8xf32>
    %68 = vector.extract_strided_slice %57 {offsets = [0, 5, 0], sizes = [8, 1, 8], strides = [1, 1, 1]} : vector<8x8x8xf32> to vector<8x1x8xf32>
    %69 = vector.shape_cast %68 : vector<8x1x8xf32> to vector<8x8xf32>
    %70 = vector.extract_strided_slice %57 {offsets = [0, 6, 0], sizes = [8, 1, 8], strides = [1, 1, 1]} : vector<8x8x8xf32> to vector<8x1x8xf32>
    %71 = vector.shape_cast %70 : vector<8x1x8xf32> to vector<8x8xf32>
    %72 = vector.extract_strided_slice %57 {offsets = [0, 7, 0], sizes = [8, 1, 8], strides = [1, 1, 1]} : vector<8x8x8xf32> to vector<8x1x8xf32>
    %73 = vector.shape_cast %72 : vector<8x1x8xf32> to vector<8x8xf32>
    %74 = tpu.concatenate %59, %61, %63, %65, %67, %69, %71, %73 in 1 : vector<8x8xf32>, vector<8x8xf32>, vector<8x8xf32>, vector<8x8xf32>, vector<8x8xf32>, vector<8x8xf32>, vector<8x8xf32>, vector<8x8xf32> -> vector<8x64xf32>
    %c0_63 = arith.constant 0 : index
    %c0_64 = arith.constant 0 : index
    %c0_65 = arith.constant 0 : index
    %c0_66 = arith.constant 0 : index
    %75 = vector.load %arg7[%c0_63, %c0_64, %c0_65, %c0_66] : memref<1x4x8x64xf32, #tpu.memory_space<vmem>>, vector<1x1x8x64xf32>
    %76 = vector.shape_cast %75 : vector<1x1x8x64xf32> to vector<8x64xf32>
    %77 = vector.shape_cast %74 : vector<8x64xf32> to vector<1x1x8x64xf32>
    tpu.vector_store %arg7[%c0_63, %c0_64, %c0_65, %c0_66], %77 {strides = array<i32>} : memref<1x4x8x64xf32, #tpu.memory_space<vmem>>, vector<1x1x8x64xf32>,
    %c0_67 = arith.constant 0 : index
    %c0_68 = arith.constant 0 : index
    %78 = vector.load %arg6[%c0_67, %c0_68] : memref<1x8xf32, #tpu.memory_space<vmem>>, vector<1x8xf32>
    %79 = vector.shape_cast %78 : vector<1x8xf32> to vector<1x8xf32>
    %80 = vector.broadcast %79 : vector<1x8xf32> to vector<64x8xf32>
    %c0_69 = arith.constant 0 : index
    %c1_70 = arith.constant 1 : index
    %c0_71 = arith.constant 0 : index
    %c0_72 = arith.constant 0 : index
    %81 = vector.load %arg2[%c0_69, %c1_70, %c0_71, %c0_72] : memref<1x4x80x12xbf16, #tpu.memory_space<vmem>>, vector<1x1x64x12xbf16>
    %82 = vector.shape_cast %81 : vector<1x1x64x12xbf16> to vector<64x12xbf16>
    %c0_73 = arith.constant 0 : index
    %c0_74 = arith.constant 0 : index
    %c0_75 = arith.constant 0 : index
    %83 = vector.load %arg5[%c0_73, %c0_74, %c0_75] : memref<9x12x8xbf16, #tpu.memory_space<vmem>>, vector<1x12x8xbf16>
    %84 = vector.shape_cast %83 : vector<1x12x8xbf16> to vector<12x8xbf16>
    %cst_76 = arith.constant dense<0.000000e+00> : vector<64x8xf32>
    %85 = tpu.matmul %82, %84, %cst_76 {dimension_numbers = #tpu.dot_dimension_numbers<[1], [0], [0], [1], [0, 0, 1, 1], [], []>} : vector<64x12xbf16>, vector<12x8xbf16>, vector<64x8xf32> -> vector<64x8xf32>
    %86 = arith.addf %80, %85 : vector<64x8xf32>
    %c0_77 = arith.constant 0 : index
    %c1_78 = arith.constant 1 : index
    %c8_79 = arith.constant 8 : index
    %c0_80 = arith.constant 0 : index
    %87 = vector.load %arg2[%c0_77, %c1_78, %c8_79, %c0_80] : memref<1x4x80x12xbf16, #tpu.memory_space<vmem>>, vector<1x1x64x12xbf16>
    %88 = vector.shape_cast %87 : vector<1x1x64x12xbf16> to vector<64x12xbf16>
    %c1_81 = arith.constant 1 : index
    %c0_82 = arith.constant 0 : index
    %c0_83 = arith.constant 0 : index
    %89 = vector.load %arg5[%c1_81, %c0_82, %c0_83] : memref<9x12x8xbf16, #tpu.memory_space<vmem>>, vector<1x12x8xbf16>
    %90 = vector.shape_cast %89 : vector<1x12x8xbf16> to vector<12x8xbf16>
    %cst_84 = arith.constant dense<0.000000e+00> : vector<64x8xf32>
    %91 = tpu.matmul %88, %90, %cst_84 {dimension_numbers = #tpu.dot_dimension_numbers<[1], [0], [0], [1], [0, 0, 1, 1], [], []>} : vector<64x12xbf16>, vector<12x8xbf16>, vector<64x8xf32> -> vector<64x8xf32>
    %92 = arith.addf %86, %91 : vector<64x8xf32>
    %c0_85 = arith.constant 0 : index
    %c1_86 = arith.constant 1 : index
    %c16_87 = arith.constant 16 : index
    %c0_88 = arith.constant 0 : index
    %93 = vector.load %arg2[%c0_85, %c1_86, %c16_87, %c0_88] : memref<1x4x80x12xbf16, #tpu.memory_space<vmem>>, vector<1x1x64x12xbf16>
    %94 = vector.shape_cast %93 : vector<1x1x64x12xbf16> to vector<64x12xbf16>
    %c2_89 = arith.constant 2 : index
    %c0_90 = arith.constant 0 : index
    %c0_91 = arith.constant 0 : index
    %95 = vector.load %arg5[%c2_89, %c0_90, %c0_91] : memref<9x12x8xbf16, #tpu.memory_space<vmem>>, vector<1x12x8xbf16>
    %96 = vector.shape_cast %95 : vector<1x12x8xbf16> to vector<12x8xbf16>
    %cst_92 = arith.constant dense<0.000000e+00> : vector<64x8xf32>
    %97 = tpu.matmul %94, %96, %cst_92 {dimension_numbers = #tpu.dot_dimension_numbers<[1], [0], [0], [1], [0, 0, 1, 1], [], []>} : vector<64x12xbf16>, vector<12x8xbf16>, vector<64x8xf32> -> vector<64x8xf32>
    %98 = arith.addf %92, %97 : vector<64x8xf32>
    %c0_93 = arith.constant 0 : index
    %c2_94 = arith.constant 2 : index
    %c0_95 = arith.constant 0 : index
    %c0_96 = arith.constant 0 : index
    %99 = vector.load %arg2[%c0_93, %c2_94, %c0_95, %c0_96] : memref<1x4x80x12xbf16, #tpu.memory_space<vmem>>, vector<1x1x64x12xbf16>
    %100 = vector.shape_cast %99 : vector<1x1x64x12xbf16> to vector<64x12xbf16>
    %c3_97 = arith.constant 3 : index
    %c0_98 = arith.constant 0 : index
    %c0_99 = arith.constant 0 : index
    %101 = vector.load %arg5[%c3_97, %c0_98, %c0_99] : memref<9x12x8xbf16, #tpu.memory_space<vmem>>, vector<1x12x8xbf16>
    %102 = vector.shape_cast %101 : vector<1x12x8xbf16> to vector<12x8xbf16>
    %cst_100 = arith.constant dense<0.000000e+00> : vector<64x8xf32>
    %103 = tpu.matmul %100, %102, %cst_100 {dimension_numbers = #tpu.dot_dimension_numbers<[1], [0], [0], [1], [0, 0, 1, 1], [], []>} : vector<64x12xbf16>, vector<12x8xbf16>, vector<64x8xf32> -> vector<64x8xf32>
    %104 = arith.addf %98, %103 : vector<64x8xf32>
    %c0_101 = arith.constant 0 : index
    %c2_102 = arith.constant 2 : index
    %c8_103 = arith.constant 8 : index
    %c0_104 = arith.constant 0 : index
    %105 = vector.load %arg2[%c0_101, %c2_102, %c8_103, %c0_104] : memref<1x4x80x12xbf16, #tpu.memory_space<vmem>>, vector<1x1x64x12xbf16>
    %106 = vector.shape_cast %105 : vector<1x1x64x12xbf16> to vector<64x12xbf16>
    %c4_105 = arith.constant 4 : index
    %c0_106 = arith.constant 0 : index
    %c0_107 = arith.constant 0 : index
    %107 = vector.load %arg5[%c4_105, %c0_106, %c0_107] : memref<9x12x8xbf16, #tpu.memory_space<vmem>>, vector<1x12x8xbf16>
    %108 = vector.shape_cast %107 : vector<1x12x8xbf16> to vector<12x8xbf16>
    %cst_108 = arith.constant dense<0.000000e+00> : vector<64x8xf32>
    %109 = tpu.matmul %106, %108, %cst_108 {dimension_numbers = #tpu.dot_dimension_numbers<[1], [0], [0], [1], [0, 0, 1, 1], [], []>} : vector<64x12xbf16>, vector<12x8xbf16>, vector<64x8xf32> -> vector<64x8xf32>
    %110 = arith.addf %104, %109 : vector<64x8xf32>
    %c0_109 = arith.constant 0 : index
    %c2_110 = arith.constant 2 : index
    %c16_111 = arith.constant 16 : index
    %c0_112 = arith.constant 0 : index
    %111 = vector.load %arg2[%c0_109, %c2_110, %c16_111, %c0_112] : memref<1x4x80x12xbf16, #tpu.memory_space<vmem>>, vector<1x1x64x12xbf16>
    %112 = vector.shape_cast %111 : vector<1x1x64x12xbf16> to vector<64x12xbf16>
    %c5_113 = arith.constant 5 : index
    %c0_114 = arith.constant 0 : index
    %c0_115 = arith.constant 0 : index
    %113 = vector.load %arg5[%c5_113, %c0_114, %c0_115] : memref<9x12x8xbf16, #tpu.memory_space<vmem>>, vector<1x12x8xbf16>
    %114 = vector.shape_cast %113 : vector<1x12x8xbf16> to vector<12x8xbf16>
    %cst_116 = arith.constant dense<0.000000e+00> : vector<64x8xf32>
    %115 = tpu.matmul %112, %114, %cst_116 {dimension_numbers = #tpu.dot_dimension_numbers<[1], [0], [0], [1], [0, 0, 1, 1], [], []>} : vector<64x12xbf16>, vector<12x8xbf16>, vector<64x8xf32> -> vector<64x8xf32>
    %116 = arith.addf %110, %115 : vector<64x8xf32>
    %c0_117 = arith.constant 0 : index
    %c3_118 = arith.constant 3 : index
    %c0_119 = arith.constant 0 : index
    %c0_120 = arith.constant 0 : index
    %117 = vector.load %arg2[%c0_117, %c3_118, %c0_119, %c0_120] : memref<1x4x80x12xbf16, #tpu.memory_space<vmem>>, vector<1x1x64x12xbf16>
    %118 = vector.shape_cast %117 : vector<1x1x64x12xbf16> to vector<64x12xbf16>
    %c6_121 = arith.constant 6 : index
    %c0_122 = arith.constant 0 : index
    %c0_123 = arith.constant 0 : index
    %119 = vector.load %arg5[%c6_121, %c0_122, %c0_123] : memref<9x12x8xbf16, #tpu.memory_space<vmem>>, vector<1x12x8xbf16>
    %120 = vector.shape_cast %119 : vector<1x12x8xbf16> to vector<12x8xbf16>
    %cst_124 = arith.constant dense<0.000000e+00> : vector<64x8xf32>
    %121 = tpu.matmul %118, %120, %cst_124 {dimension_numbers = #tpu.dot_dimension_numbers<[1], [0], [0], [1], [0, 0, 1, 1], [], []>} : vector<64x12xbf16>, vector<12x8xbf16>, vector<64x8xf32> -> vector<64x8xf32>
    %122 = arith.addf %116, %121 : vector<64x8xf32>
    %c0_125 = arith.constant 0 : index
    %c3_126 = arith.constant 3 : index
    %c8_127 = arith.constant 8 : index
    %c0_128 = arith.constant 0 : index
    %123 = vector.load %arg2[%c0_125, %c3_126, %c8_127, %c0_128] : memref<1x4x80x12xbf16, #tpu.memory_space<vmem>>, vector<1x1x64x12xbf16>
    %124 = vector.shape_cast %123 : vector<1x1x64x12xbf16> to vector<64x12xbf16>
    %c7_129 = arith.constant 7 : index
    %c0_130 = arith.constant 0 : index
    %c0_131 = arith.constant 0 : index
    %125 = vector.load %arg5[%c7_129, %c0_130, %c0_131] : memref<9x12x8xbf16, #tpu.memory_space<vmem>>, vector<1x12x8xbf16>
    %126 = vector.shape_cast %125 : vector<1x12x8xbf16> to vector<12x8xbf16>
    %cst_132 = arith.constant dense<0.000000e+00> : vector<64x8xf32>
    %127 = tpu.matmul %124, %126, %cst_132 {dimension_numbers = #tpu.dot_dimension_numbers<[1], [0], [0], [1], [0, 0, 1, 1], [], []>} : vector<64x12xbf16>, vector<12x8xbf16>, vector<64x8xf32> -> vector<64x8xf32>
    %128 = arith.addf %122, %127 : vector<64x8xf32>
    %c0_133 = arith.constant 0 : index
    %c3_134 = arith.constant 3 : index
    %c16_135 = arith.constant 16 : index
    %c0_136 = arith.constant 0 : index
    %129 = vector.load %arg2[%c0_133, %c3_134, %c16_135, %c0_136] : memref<1x4x80x12xbf16, #tpu.memory_space<vmem>>, vector<1x1x64x12xbf16>
    %130 = vector.shape_cast %129 : vector<1x1x64x12xbf16> to vector<64x12xbf16>
    %c8_137 = arith.constant 8 : index
    %c0_138 = arith.constant 0 : index
    %c0_139 = arith.constant 0 : index
    %131 = vector.load %arg5[%c8_137, %c0_138, %c0_139] : memref<9x12x8xbf16, #tpu.memory_space<vmem>>, vector<1x12x8xbf16>
    %132 = vector.shape_cast %131 : vector<1x12x8xbf16> to vector<12x8xbf16>
    %cst_140 = arith.constant dense<0.000000e+00> : vector<64x8xf32>
    %133 = tpu.matmul %130, %132, %cst_140 {dimension_numbers = #tpu.dot_dimension_numbers<[1], [0], [0], [1], [0, 0, 1, 1], [], []>} : vector<64x12xbf16>, vector<12x8xbf16>, vector<64x8xf32> -> vector<64x8xf32>
    %134 = arith.addf %128, %133 : vector<64x8xf32>
    %135 = vector.shape_cast %134 : vector<64x8xf32> to vector<8x8x8xf32>
    %136 = vector.extract_strided_slice %135 {offsets = [0, 0, 0], sizes = [8, 1, 8], strides = [1, 1, 1]} : vector<8x8x8xf32> to vector<8x1x8xf32>
    %137 = vector.shape_cast %136 : vector<8x1x8xf32> to vector<8x8xf32>
    %138 = vector.extract_strided_slice %135 {offsets = [0, 1, 0], sizes = [8, 1, 8], strides = [1, 1, 1]} : vector<8x8x8xf32> to vector<8x1x8xf32>
    %139 = vector.shape_cast %138 : vector<8x1x8xf32> to vector<8x8xf32>
    %140 = vector.extract_strided_slice %135 {offsets = [0, 2, 0], sizes = [8, 1, 8], strides = [1, 1, 1]} : vector<8x8x8xf32> to vector<8x1x8xf32>
    %141 = vector.shape_cast %140 : vector<8x1x8xf32> to vector<8x8xf32>
    %142 = vector.extract_strided_slice %135 {offsets = [0, 3, 0], sizes = [8, 1, 8], strides = [1, 1, 1]} : vector<8x8x8xf32> to vector<8x1x8xf32>
    %143 = vector.shape_cast %142 : vector<8x1x8xf32> to vector<8x8xf32>
    %144 = vector.extract_strided_slice %135 {offsets = [0, 4, 0], sizes = [8, 1, 8], strides = [1, 1, 1]} : vector<8x8x8xf32> to vector<8x1x8xf32>
    %145 = vector.shape_cast %144 : vector<8x1x8xf32> to vector<8x8xf32>
    %146 = vector.extract_strided_slice %135 {offsets = [0, 5, 0], sizes = [8, 1, 8], strides = [1, 1, 1]} : vector<8x8x8xf32> to vector<8x1x8xf32>
    %147 = vector.shape_cast %146 : vector<8x1x8xf32> to vector<8x8xf32>
    %148 = vector.extract_strided_slice %135 {offsets = [0, 6, 0], sizes = [8, 1, 8], strides = [1, 1, 1]} : vector<8x8x8xf32> to vector<8x1x8xf32>
    %149 = vector.shape_cast %148 : vector<8x1x8xf32> to vector<8x8xf32>
    %150 = vector.extract_strided_slice %135 {offsets = [0, 7, 0], sizes = [8, 1, 8], strides = [1, 1, 1]} : vector<8x8x8xf32> to vector<8x1x8xf32>
    %151 = vector.shape_cast %150 : vector<8x1x8xf32> to vector<8x8xf32>
    %152 = tpu.concatenate %137, %139, %141, %143, %145, %147, %149, %151 in 1 : vector<8x8xf32>, vector<8x8xf32>, vector<8x8xf32>, vector<8x8xf32>, vector<8x8xf32>, vector<8x8xf32>, vector<8x8xf32>, vector<8x8xf32> -> vector<8x64xf32>
    %c0_141 = arith.constant 0 : index
    %c1_142 = arith.constant 1 : index
    %c0_143 = arith.constant 0 : index
    %c0_144 = arith.constant 0 : index
    %153 = vector.load %arg7[%c0_141, %c1_142, %c0_143, %c0_144] : memref<1x4x8x64xf32, #tpu.memory_space<vmem>>, vector<1x1x8x64xf32>
    %154 = vector.shape_cast %153 : vector<1x1x8x64xf32> to vector<8x64xf32>
    %155 = vector.shape_cast %152 : vector<8x64xf32> to vector<1x1x8x64xf32>
    tpu.vector_store %arg7[%c0_141, %c1_142, %c0_143, %c0_144], %155 {strides = array<i32>} : memref<1x4x8x64xf32, #tpu.memory_space<vmem>>, vector<1x1x8x64xf32>,
    %c0_145 = arith.constant 0 : index
    %c0_146 = arith.constant 0 : index
    %156 = vector.load %arg6[%c0_145, %c0_146] : memref<1x8xf32, #tpu.memory_space<vmem>>, vector<1x8xf32>
    %157 = vector.shape_cast %156 : vector<1x8xf32> to vector<1x8xf32>
    %158 = vector.broadcast %157 : vector<1x8xf32> to vector<64x8xf32>
    %c0_147 = arith.constant 0 : index
    %c2_148 = arith.constant 2 : index
    %c0_149 = arith.constant 0 : index
    %c0_150 = arith.constant 0 : index
    %159 = vector.load %arg2[%c0_147, %c2_148, %c0_149, %c0_150] : memref<1x4x80x12xbf16, #tpu.memory_space<vmem>>, vector<1x1x64x12xbf16>
    %160 = vector.shape_cast %159 : vector<1x1x64x12xbf16> to vector<64x12xbf16>
    %c0_151 = arith.constant 0 : index
    %c0_152 = arith.constant 0 : index
    %c0_153 = arith.constant 0 : index
    %161 = vector.load %arg5[%c0_151, %c0_152, %c0_153] : memref<9x12x8xbf16, #tpu.memory_space<vmem>>, vector<1x12x8xbf16>
    %162 = vector.shape_cast %161 : vector<1x12x8xbf16> to vector<12x8xbf16>
    %cst_154 = arith.constant dense<0.000000e+00> : vector<64x8xf32>
    %163 = tpu.matmul %160, %162, %cst_154 {dimension_numbers = #tpu.dot_dimension_numbers<[1], [0], [0], [1], [0, 0, 1, 1], [], []>} : vector<64x12xbf16>, vector<12x8xbf16>, vector<64x8xf32> -> vector<64x8xf32>
    %164 = arith.addf %158, %163 : vector<64x8xf32>
    %c0_155 = arith.constant 0 : index
    %c2_156 = arith.constant 2 : index
    %c8_157 = arith.constant 8 : index
    %c0_158 = arith.constant 0 : index
    %165 = vector.load %arg2[%c0_155, %c2_156, %c8_157, %c0_158] : memref<1x4x80x12xbf16, #tpu.memory_space<vmem>>, vector<1x1x64x12xbf16>
    %166 = vector.shape_cast %165 : vector<1x1x64x12xbf16> to vector<64x12xbf16>
    %c1_159 = arith.constant 1 : index
    %c0_160 = arith.constant 0 : index
    %c0_161 = arith.constant 0 : index
    %167 = vector.load %arg5[%c1_159, %c0_160, %c0_161] : memref<9x12x8xbf16, #tpu.memory_space<vmem>>, vector<1x12x8xbf16>
    %168 = vector.shape_cast %167 : vector<1x12x8xbf16> to vector<12x8xbf16>
    %cst_162 = arith.constant dense<0.000000e+00> : vector<64x8xf32>
    %169 = tpu.matmul %166, %168, %cst_162 {dimension_numbers = #tpu.dot_dimension_numbers<[1], [0], [0], [1], [0, 0, 1, 1], [], []>} : vector<64x12xbf16>, vector<12x8xbf16>, vector<64x8xf32> -> vector<64x8xf32>
    %170 = arith.addf %164, %169 : vector<64x8xf32>
    %c0_163 = arith.constant 0 : index
    %c2_164 = arith.constant 2 : index
    %c16_165 = arith.constant 16 : index
    %c0_166 = arith.constant 0 : index
    %171 = vector.load %arg2[%c0_163, %c2_164, %c16_165, %c0_166] : memref<1x4x80x12xbf16, #tpu.memory_space<vmem>>, vector<1x1x64x12xbf16>
    %172 = vector.shape_cast %171 : vector<1x1x64x12xbf16> to vector<64x12xbf16>
    %c2_167 = arith.constant 2 : index
    %c0_168 = arith.constant 0 : index
    %c0_169 = arith.constant 0 : index
    %173 = vector.load %arg5[%c2_167, %c0_168, %c0_169] : memref<9x12x8xbf16, #tpu.memory_space<vmem>>, vector<1x12x8xbf16>
    %174 = vector.shape_cast %173 : vector<1x12x8xbf16> to vector<12x8xbf16>
    %cst_170 = arith.constant dense<0.000000e+00> : vector<64x8xf32>
    %175 = tpu.matmul %172, %174, %cst_170 {dimension_numbers = #tpu.dot_dimension_numbers<[1], [0], [0], [1], [0, 0, 1, 1], [], []>} : vector<64x12xbf16>, vector<12x8xbf16>, vector<64x8xf32> -> vector<64x8xf32>
    %176 = arith.addf %170, %175 : vector<64x8xf32>
    %c0_171 = arith.constant 0 : index
    %c3_172 = arith.constant 3 : index
    %c0_173 = arith.constant 0 : index
    %c0_174 = arith.constant 0 : index
    %177 = vector.load %arg2[%c0_171, %c3_172, %c0_173, %c0_174] : memref<1x4x80x12xbf16, #tpu.memory_space<vmem>>, vector<1x1x64x12xbf16>
    %178 = vector.shape_cast %177 : vector<1x1x64x12xbf16> to vector<64x12xbf16>
    %c3_175 = arith.constant 3 : index
    %c0_176 = arith.constant 0 : index
    %c0_177 = arith.constant 0 : index
    %179 = vector.load %arg5[%c3_175, %c0_176, %c0_177] : memref<9x12x8xbf16, #tpu.memory_space<vmem>>, vector<1x12x8xbf16>
    %180 = vector.shape_cast %179 : vector<1x12x8xbf16> to vector<12x8xbf16>
    %cst_178 = arith.constant dense<0.000000e+00> : vector<64x8xf32>
    %181 = tpu.matmul %178, %180, %cst_178 {dimension_numbers = #tpu.dot_dimension_numbers<[1], [0], [0], [1], [0, 0, 1, 1], [], []>} : vector<64x12xbf16>, vector<12x8xbf16>, vector<64x8xf32> -> vector<64x8xf32>
    %182 = arith.addf %176, %181 : vector<64x8xf32>
    %c0_179 = arith.constant 0 : index
    %c3_180 = arith.constant 3 : index
    %c8_181 = arith.constant 8 : index
    %c0_182 = arith.constant 0 : index
    %183 = vector.load %arg2[%c0_179, %c3_180, %c8_181, %c0_182] : memref<1x4x80x12xbf16, #tpu.memory_space<vmem>>, vector<1x1x64x12xbf16>
    %184 = vector.shape_cast %183 : vector<1x1x64x12xbf16> to vector<64x12xbf16>
    %c4_183 = arith.constant 4 : index
    %c0_184 = arith.constant 0 : index
    %c0_185 = arith.constant 0 : index
    %185 = vector.load %arg5[%c4_183, %c0_184, %c0_185] : memref<9x12x8xbf16, #tpu.memory_space<vmem>>, vector<1x12x8xbf16>
    %186 = vector.shape_cast %185 : vector<1x12x8xbf16> to vector<12x8xbf16>
    %cst_186 = arith.constant dense<0.000000e+00> : vector<64x8xf32>
    %187 = tpu.matmul %184, %186, %cst_186 {dimension_numbers = #tpu.dot_dimension_numbers<[1], [0], [0], [1], [0, 0, 1, 1], [], []>} : vector<64x12xbf16>, vector<12x8xbf16>, vector<64x8xf32> -> vector<64x8xf32>
    %188 = arith.addf %182, %187 : vector<64x8xf32>
    %c0_187 = arith.constant 0 : index
    %c3_188 = arith.constant 3 : index
    %c16_189 = arith.constant 16 : index
    %c0_190 = arith.constant 0 : index
    %189 = vector.load %arg2[%c0_187, %c3_188, %c16_189, %c0_190] : memref<1x4x80x12xbf16, #tpu.memory_space<vmem>>, vector<1x1x64x12xbf16>
    %190 = vector.shape_cast %189 : vector<1x1x64x12xbf16> to vector<64x12xbf16>
    %c5_191 = arith.constant 5 : index
    %c0_192 = arith.constant 0 : index
    %c0_193 = arith.constant 0 : index
    %191 = vector.load %arg5[%c5_191, %c0_192, %c0_193] : memref<9x12x8xbf16, #tpu.memory_space<vmem>>, vector<1x12x8xbf16>
    %192 = vector.shape_cast %191 : vector<1x12x8xbf16> to vector<12x8xbf16>
    %cst_194 = arith.constant dense<0.000000e+00> : vector<64x8xf32>
    %193 = tpu.matmul %190, %192, %cst_194 {dimension_numbers = #tpu.dot_dimension_numbers<[1], [0], [0], [1], [0, 0, 1, 1], [], []>} : vector<64x12xbf16>, vector<12x8xbf16>, vector<64x8xf32> -> vector<64x8xf32>
    %194 = arith.addf %188, %193 : vector<64x8xf32>
    %c0_195 = arith.constant 0 : index
    %c0_196 = arith.constant 0 : index
    %c0_197 = arith.constant 0 : index
    %c0_198 = arith.constant 0 : index
    %195 = vector.load %arg3[%c0_195, %c0_196, %c0_197, %c0_198] : memref<1x1x80x12xbf16, #tpu.memory_space<vmem>>, vector<1x1x64x12xbf16>
    %196 = vector.shape_cast %195 : vector<1x1x64x12xbf16> to vector<64x12xbf16>
    %c6_199 = arith.constant 6 : index
    %c0_200 = arith.constant 0 : index
    %c0_201 = arith.constant 0 : index
    %197 = vector.load %arg5[%c6_199, %c0_200, %c0_201] : memref<9x12x8xbf16, #tpu.memory_space<vmem>>, vector<1x12x8xbf16>
    %198 = vector.shape_cast %197 : vector<1x12x8xbf16> to vector<12x8xbf16>
    %cst_202 = arith.constant dense<0.000000e+00> : vector<64x8xf32>
    %199 = tpu.matmul %196, %198, %cst_202 {dimension_numbers = #tpu.dot_dimension_numbers<[1], [0], [0], [1], [0, 0, 1, 1], [], []>} : vector<64x12xbf16>, vector<12x8xbf16>, vector<64x8xf32> -> vector<64x8xf32>
    %200 = arith.addf %194, %199 : vector<64x8xf32>
    %c0_203 = arith.constant 0 : index
    %c0_204 = arith.constant 0 : index
    %c8_205 = arith.constant 8 : index
    %c0_206 = arith.constant 0 : index
    %201 = vector.load %arg3[%c0_203, %c0_204, %c8_205, %c0_206] : memref<1x1x80x12xbf16, #tpu.memory_space<vmem>>, vector<1x1x64x12xbf16>
    %202 = vector.shape_cast %201 : vector<1x1x64x12xbf16> to vector<64x12xbf16>
    %c7_207 = arith.constant 7 : index
    %c0_208 = arith.constant 0 : index
    %c0_209 = arith.constant 0 : index
    %203 = vector.load %arg5[%c7_207, %c0_208, %c0_209] : memref<9x12x8xbf16, #tpu.memory_space<vmem>>, vector<1x12x8xbf16>
    %204 = vector.shape_cast %203 : vector<1x12x8xbf16> to vector<12x8xbf16>
    %cst_210 = arith.constant dense<0.000000e+00> : vector<64x8xf32>
    %205 = tpu.matmul %202, %204, %cst_210 {dimension_numbers = #tpu.dot_dimension_numbers<[1], [0], [0], [1], [0, 0, 1, 1], [], []>} : vector<64x12xbf16>, vector<12x8xbf16>, vector<64x8xf32> -> vector<64x8xf32>
    %206 = arith.addf %200, %205 : vector<64x8xf32>
    %c0_211 = arith.constant 0 : index
    %c0_212 = arith.constant 0 : index
    %c16_213 = arith.constant 16 : index
    %c0_214 = arith.constant 0 : index
    %207 = vector.load %arg3[%c0_211, %c0_212, %c16_213, %c0_214] : memref<1x1x80x12xbf16, #tpu.memory_space<vmem>>, vector<1x1x64x12xbf16>
    %208 = vector.shape_cast %207 : vector<1x1x64x12xbf16> to vector<64x12xbf16>
    %c8_215 = arith.constant 8 : index
    %c0_216 = arith.constant 0 : index
    %c0_217 = arith.constant 0 : index
    %209 = vector.load %arg5[%c8_215, %c0_216, %c0_217] : memref<9x12x8xbf16, #tpu.memory_space<vmem>>, vector<1x12x8xbf16>
    %210 = vector.shape_cast %209 : vector<1x12x8xbf16> to vector<12x8xbf16>
    %cst_218 = arith.constant dense<0.000000e+00> : vector<64x8xf32>
    %211 = tpu.matmul %208, %210, %cst_218 {dimension_numbers = #tpu.dot_dimension_numbers<[1], [0], [0], [1], [0, 0, 1, 1], [], []>} : vector<64x12xbf16>, vector<12x8xbf16>, vector<64x8xf32> -> vector<64x8xf32>
    %212 = arith.addf %206, %211 : vector<64x8xf32>
    %213 = vector.shape_cast %212 : vector<64x8xf32> to vector<8x8x8xf32>
    %214 = vector.extract_strided_slice %213 {offsets = [0, 0, 0], sizes = [8, 1, 8], strides = [1, 1, 1]} : vector<8x8x8xf32> to vector<8x1x8xf32>
    %215 = vector.shape_cast %214 : vector<8x1x8xf32> to vector<8x8xf32>
    %216 = vector.extract_strided_slice %213 {offsets = [0, 1, 0], sizes = [8, 1, 8], strides = [1, 1, 1]} : vector<8x8x8xf32> to vector<8x1x8xf32>
    %217 = vector.shape_cast %216 : vector<8x1x8xf32> to vector<8x8xf32>
    %218 = vector.extract_strided_slice %213 {offsets = [0, 2, 0], sizes = [8, 1, 8], strides = [1, 1, 1]} : vector<8x8x8xf32> to vector<8x1x8xf32>
    %219 = vector.shape_cast %218 : vector<8x1x8xf32> to vector<8x8xf32>
    %220 = vector.extract_strided_slice %213 {offsets = [0, 3, 0], sizes = [8, 1, 8], strides = [1, 1, 1]} : vector<8x8x8xf32> to vector<8x1x8xf32>
    %221 = vector.shape_cast %220 : vector<8x1x8xf32> to vector<8x8xf32>
    %222 = vector.extract_strided_slice %213 {offsets = [0, 4, 0], sizes = [8, 1, 8], strides = [1, 1, 1]} : vector<8x8x8xf32> to vector<8x1x8xf32>
    %223 = vector.shape_cast %222 : vector<8x1x8xf32> to vector<8x8xf32>
    %224 = vector.extract_strided_slice %213 {offsets = [0, 5, 0], sizes = [8, 1, 8], strides = [1, 1, 1]} : vector<8x8x8xf32> to vector<8x1x8xf32>
    %225 = vector.shape_cast %224 : vector<8x1x8xf32> to vector<8x8xf32>
    %226 = vector.extract_strided_slice %213 {offsets = [0, 6, 0], sizes = [8, 1, 8], strides = [1, 1, 1]} : vector<8x8x8xf32> to vector<8x1x8xf32>
    %227 = vector.shape_cast %226 : vector<8x1x8xf32> to vector<8x8xf32>
    %228 = vector.extract_strided_slice %213 {offsets = [0, 7, 0], sizes = [8, 1, 8], strides = [1, 1, 1]} : vector<8x8x8xf32> to vector<8x1x8xf32>
    %229 = vector.shape_cast %228 : vector<8x1x8xf32> to vector<8x8xf32>
    %230 = tpu.concatenate %215, %217, %219, %221, %223, %225, %227, %229 in 1 : vector<8x8xf32>, vector<8x8xf32>, vector<8x8xf32>, vector<8x8xf32>, vector<8x8xf32>, vector<8x8xf32>, vector<8x8xf32>, vector<8x8xf32> -> vector<8x64xf32>
    %c0_219 = arith.constant 0 : index
    %c2_220 = arith.constant 2 : index
    %c0_221 = arith.constant 0 : index
    %c0_222 = arith.constant 0 : index
    %231 = vector.load %arg7[%c0_219, %c2_220, %c0_221, %c0_222] : memref<1x4x8x64xf32, #tpu.memory_space<vmem>>, vector<1x1x8x64xf32>
    %232 = vector.shape_cast %231 : vector<1x1x8x64xf32> to vector<8x64xf32>
    %233 = vector.shape_cast %230 : vector<8x64xf32> to vector<1x1x8x64xf32>
    tpu.vector_store %arg7[%c0_219, %c2_220, %c0_221, %c0_222], %233 {strides = array<i32>} : memref<1x4x8x64xf32, #tpu.memory_space<vmem>>, vector<1x1x8x64xf32>,
    %c0_223 = arith.constant 0 : index
    %c0_224 = arith.constant 0 : index
    %234 = vector.load %arg6[%c0_223, %c0_224] : memref<1x8xf32, #tpu.memory_space<vmem>>, vector<1x8xf32>
    %235 = vector.shape_cast %234 : vector<1x8xf32> to vector<1x8xf32>
    %236 = vector.broadcast %235 : vector<1x8xf32> to vector<64x8xf32>
    %c0_225 = arith.constant 0 : index
    %c3_226 = arith.constant 3 : index
    %c0_227 = arith.constant 0 : index
    %c0_228 = arith.constant 0 : index
    %237 = vector.load %arg2[%c0_225, %c3_226, %c0_227, %c0_228] : memref<1x4x80x12xbf16, #tpu.memory_space<vmem>>, vector<1x1x64x12xbf16>
    %238 = vector.shape_cast %237 : vector<1x1x64x12xbf16> to vector<64x12xbf16>
    %c0_229 = arith.constant 0 : index
    %c0_230 = arith.constant 0 : index
    %c0_231 = arith.constant 0 : index
    %239 = vector.load %arg5[%c0_229, %c0_230, %c0_231] : memref<9x12x8xbf16, #tpu.memory_space<vmem>>, vector<1x12x8xbf16>
    %240 = vector.shape_cast %239 : vector<1x12x8xbf16> to vector<12x8xbf16>
    %cst_232 = arith.constant dense<0.000000e+00> : vector<64x8xf32>
    %241 = tpu.matmul %238, %240, %cst_232 {dimension_numbers = #tpu.dot_dimension_numbers<[1], [0], [0], [1], [0, 0, 1, 1], [], []>} : vector<64x12xbf16>, vector<12x8xbf16>, vector<64x8xf32> -> vector<64x8xf32>
    %242 = arith.addf %236, %241 : vector<64x8xf32>
    %c0_233 = arith.constant 0 : index
    %c3_234 = arith.constant 3 : index
    %c8_235 = arith.constant 8 : index
    %c0_236 = arith.constant 0 : index
    %243 = vector.load %arg2[%c0_233, %c3_234, %c8_235, %c0_236] : memref<1x4x80x12xbf16, #tpu.memory_space<vmem>>, vector<1x1x64x12xbf16>
    %244 = vector.shape_cast %243 : vector<1x1x64x12xbf16> to vector<64x12xbf16>
    %c1_237 = arith.constant 1 : index
    %c0_238 = arith.constant 0 : index
    %c0_239 = arith.constant 0 : index
    %245 = vector.load %arg5[%c1_237, %c0_238, %c0_239] : memref<9x12x8xbf16, #tpu.memory_space<vmem>>, vector<1x12x8xbf16>
    %246 = vector.shape_cast %245 : vector<1x12x8xbf16> to vector<12x8xbf16>
    %cst_240 = arith.constant dense<0.000000e+00> : vector<64x8xf32>
    %247 = tpu.matmul %244, %246, %cst_240 {dimension_numbers = #tpu.dot_dimension_numbers<[1], [0], [0], [1], [0, 0, 1, 1], [], []>} : vector<64x12xbf16>, vector<12x8xbf16>, vector<64x8xf32> -> vector<64x8xf32>
    %248 = arith.addf %242, %247 : vector<64x8xf32>
    %c0_241 = arith.constant 0 : index
    %c3_242 = arith.constant 3 : index
    %c16_243 = arith.constant 16 : index
    %c0_244 = arith.constant 0 : index
    %249 = vector.load %arg2[%c0_241, %c3_242, %c16_243, %c0_244] : memref<1x4x80x12xbf16, #tpu.memory_space<vmem>>, vector<1x1x64x12xbf16>
    %250 = vector.shape_cast %249 : vector<1x1x64x12xbf16> to vector<64x12xbf16>
    %c2_245 = arith.constant 2 : index
    %c0_246 = arith.constant 0 : index
    %c0_247 = arith.constant 0 : index
    %251 = vector.load %arg5[%c2_245, %c0_246, %c0_247] : memref<9x12x8xbf16, #tpu.memory_space<vmem>>, vector<1x12x8xbf16>
    %252 = vector.shape_cast %251 : vector<1x12x8xbf16> to vector<12x8xbf16>
    %cst_248 = arith.constant dense<0.000000e+00> : vector<64x8xf32>
    %253 = tpu.matmul %250, %252, %cst_248 {dimension_numbers = #tpu.dot_dimension_numbers<[1], [0], [0], [1], [0, 0, 1, 1], [], []>} : vector<64x12xbf16>, vector<12x8xbf16>, vector<64x8xf32> -> vector<64x8xf32>
    %254 = arith.addf %248, %253 : vector<64x8xf32>
    %c0_249 = arith.constant 0 : index
    %c0_250 = arith.constant 0 : index
    %c0_251 = arith.constant 0 : index
    %c0_252 = arith.constant 0 : index
    %255 = vector.load %arg3[%c0_249, %c0_250, %c0_251, %c0_252] : memref<1x1x80x12xbf16, #tpu.memory_space<vmem>>, vector<1x1x64x12xbf16>
    %256 = vector.shape_cast %255 : vector<1x1x64x12xbf16> to vector<64x12xbf16>
    %c3_253 = arith.constant 3 : index
    %c0_254 = arith.constant 0 : index
    %c0_255 = arith.constant 0 : index
    %257 = vector.load %arg5[%c3_253, %c0_254, %c0_255] : memref<9x12x8xbf16, #tpu.memory_space<vmem>>, vector<1x12x8xbf16>
    %258 = vector.shape_cast %257 : vector<1x12x8xbf16> to vector<12x8xbf16>
    %cst_256 = arith.constant dense<0.000000e+00> : vector<64x8xf32>
    %259 = tpu.matmul %256, %258, %cst_256 {dimension_numbers = #tpu.dot_dimension_numbers<[1], [0], [0], [1], [0, 0, 1, 1], [], []>} : vector<64x12xbf16>, vector<12x8xbf16>, vector<64x8xf32> -> vector<64x8xf32>
    %260 = arith.addf %254, %259 : vector<64x8xf32>
    %c0_257 = arith.constant 0 : index
    %c0_258 = arith.constant 0 : index
    %c8_259 = arith.constant 8 : index
    %c0_260 = arith.constant 0 : index
    %261 = vector.load %arg3[%c0_257, %c0_258, %c8_259, %c0_260] : memref<1x1x80x12xbf16, #tpu.memory_space<vmem>>, vector<1x1x64x12xbf16>
    %262 = vector.shape_cast %261 : vector<1x1x64x12xbf16> to vector<64x12xbf16>
    %c4_261 = arith.constant 4 : index
    %c0_262 = arith.constant 0 : index
    %c0_263 = arith.constant 0 : index
    %263 = vector.load %arg5[%c4_261, %c0_262, %c0_263] : memref<9x12x8xbf16, #tpu.memory_space<vmem>>, vector<1x12x8xbf16>
    %264 = vector.shape_cast %263 : vector<1x12x8xbf16> to vector<12x8xbf16>
    %cst_264 = arith.constant dense<0.000000e+00> : vector<64x8xf32>
    %265 = tpu.matmul %262, %264, %cst_264 {dimension_numbers = #tpu.dot_dimension_numbers<[1], [0], [0], [1], [0, 0, 1, 1], [], []>} : vector<64x12xbf16>, vector<12x8xbf16>, vector<64x8xf32> -> vector<64x8xf32>
    %266 = arith.addf %260, %265 : vector<64x8xf32>
    %c0_265 = arith.constant 0 : index
    %c0_266 = arith.constant 0 : index
    %c16_267 = arith.constant 16 : index
    %c0_268 = arith.constant 0 : index
    %267 = vector.load %arg3[%c0_265, %c0_266, %c16_267, %c0_268] : memref<1x1x80x12xbf16, #tpu.memory_space<vmem>>, vector<1x1x64x12xbf16>
    %268 = vector.shape_cast %267 : vector<1x1x64x12xbf16> to vector<64x12xbf16>
    %c5_269 = arith.constant 5 : index
    %c0_270 = arith.constant 0 : index
    %c0_271 = arith.constant 0 : index
    %269 = vector.load %arg5[%c5_269, %c0_270, %c0_271] : memref<9x12x8xbf16, #tpu.memory_space<vmem>>, vector<1x12x8xbf16>
    %270 = vector.shape_cast %269 : vector<1x12x8xbf16> to vector<12x8xbf16>
    %cst_272 = arith.constant dense<0.000000e+00> : vector<64x8xf32>
    %271 = tpu.matmul %268, %270, %cst_272 {dimension_numbers = #tpu.dot_dimension_numbers<[1], [0], [0], [1], [0, 0, 1, 1], [], []>} : vector<64x12xbf16>, vector<12x8xbf16>, vector<64x8xf32> -> vector<64x8xf32>
    %272 = arith.addf %266, %271 : vector<64x8xf32>
    %c0_273 = arith.constant 0 : index
    %c0_274 = arith.constant 0 : index
    %c0_275 = arith.constant 0 : index
    %c0_276 = arith.constant 0 : index
    %273 = vector.load %arg4[%c0_273, %c0_274, %c0_275, %c0_276] : memref<1x1x80x12xbf16, #tpu.memory_space<vmem>>, vector<1x1x64x12xbf16>
    %274 = vector.shape_cast %273 : vector<1x1x64x12xbf16> to vector<64x12xbf16>
    %c6_277 = arith.constant 6 : index
    %c0_278 = arith.constant 0 : index
    %c0_279 = arith.constant 0 : index
    %275 = vector.load %arg5[%c6_277, %c0_278, %c0_279] : memref<9x12x8xbf16, #tpu.memory_space<vmem>>, vector<1x12x8xbf16>
    %276 = vector.shape_cast %275 : vector<1x12x8xbf16> to vector<12x8xbf16>
    %cst_280 = arith.constant dense<0.000000e+00> : vector<64x8xf32>
    %277 = tpu.matmul %274, %276, %cst_280 {dimension_numbers = #tpu.dot_dimension_numbers<[1], [0], [0], [1], [0, 0, 1, 1], [], []>} : vector<64x12xbf16>, vector<12x8xbf16>, vector<64x8xf32> -> vector<64x8xf32>
    %278 = arith.addf %272, %277 : vector<64x8xf32>
    %c0_281 = arith.constant 0 : index
    %c0_282 = arith.constant 0 : index
    %c8_283 = arith.constant 8 : index
    %c0_284 = arith.constant 0 : index
    %279 = vector.load %arg4[%c0_281, %c0_282, %c8_283, %c0_284] : memref<1x1x80x12xbf16, #tpu.memory_space<vmem>>, vector<1x1x64x12xbf16>
    %280 = vector.shape_cast %279 : vector<1x1x64x12xbf16> to vector<64x12xbf16>
    %c7_285 = arith.constant 7 : index
    %c0_286 = arith.constant 0 : index
    %c0_287 = arith.constant 0 : index
    %281 = vector.load %arg5[%c7_285, %c0_286, %c0_287] : memref<9x12x8xbf16, #tpu.memory_space<vmem>>, vector<1x12x8xbf16>
    %282 = vector.shape_cast %281 : vector<1x12x8xbf16> to vector<12x8xbf16>
    %cst_288 = arith.constant dense<0.000000e+00> : vector<64x8xf32>
    %283 = tpu.matmul %280, %282, %cst_288 {dimension_numbers = #tpu.dot_dimension_numbers<[1], [0], [0], [1], [0, 0, 1, 1], [], []>} : vector<64x12xbf16>, vector<12x8xbf16>, vector<64x8xf32> -> vector<64x8xf32>
    %284 = arith.addf %278, %283 : vector<64x8xf32>
    %c0_289 = arith.constant 0 : index
    %c0_290 = arith.constant 0 : index
    %c16_291 = arith.constant 16 : index
    %c0_292 = arith.constant 0 : index
    %285 = vector.load %arg4[%c0_289, %c0_290, %c16_291, %c0_292] : memref<1x1x80x12xbf16, #tpu.memory_space<vmem>>, vector<1x1x64x12xbf16>
    %286 = vector.shape_cast %285 : vector<1x1x64x12xbf16> to vector<64x12xbf16>
    %c8_293 = arith.constant 8 : index
    %c0_294 = arith.constant 0 : index
    %c0_295 = arith.constant 0 : index
    %287 = vector.load %arg5[%c8_293, %c0_294, %c0_295] : memref<9x12x8xbf16, #tpu.memory_space<vmem>>, vector<1x12x8xbf16>
    %288 = vector.shape_cast %287 : vector<1x12x8xbf16> to vector<12x8xbf16>
    %cst_296 = arith.constant dense<0.000000e+00> : vector<64x8xf32>
    %289 = tpu.matmul %286, %288, %cst_296 {dimension_numbers = #tpu.dot_dimension_numbers<[1], [0], [0], [1], [0, 0, 1, 1], [], []>} : vector<64x12xbf16>, vector<12x8xbf16>, vector<64x8xf32> -> vector<64x8xf32>
    %290 = arith.addf %284, %289 : vector<64x8xf32>
    %291 = vector.shape_cast %290 : vector<64x8xf32> to vector<8x8x8xf32>
    %292 = vector.extract_strided_slice %291 {offsets = [0, 0, 0], sizes = [8, 1, 8], strides = [1, 1, 1]} : vector<8x8x8xf32> to vector<8x1x8xf32>
    %293 = vector.shape_cast %292 : vector<8x1x8xf32> to vector<8x8xf32>
    %294 = vector.extract_strided_slice %291 {offsets = [0, 1, 0], sizes = [8, 1, 8], strides = [1, 1, 1]} : vector<8x8x8xf32> to vector<8x1x8xf32>
    %295 = vector.shape_cast %294 : vector<8x1x8xf32> to vector<8x8xf32>
    %296 = vector.extract_strided_slice %291 {offsets = [0, 2, 0], sizes = [8, 1, 8], strides = [1, 1, 1]} : vector<8x8x8xf32> to vector<8x1x8xf32>
    %297 = vector.shape_cast %296 : vector<8x1x8xf32> to vector<8x8xf32>
    %298 = vector.extract_strided_slice %291 {offsets = [0, 3, 0], sizes = [8, 1, 8], strides = [1, 1, 1]} : vector<8x8x8xf32> to vector<8x1x8xf32>
    %299 = vector.shape_cast %298 : vector<8x1x8xf32> to vector<8x8xf32>
    %300 = vector.extract_strided_slice %291 {offsets = [0, 4, 0], sizes = [8, 1, 8], strides = [1, 1, 1]} : vector<8x8x8xf32> to vector<8x1x8xf32>
    %301 = vector.shape_cast %300 : vector<8x1x8xf32> to vector<8x8xf32>
    %302 = vector.extract_strided_slice %291 {offsets = [0, 5, 0], sizes = [8, 1, 8], strides = [1, 1, 1]} : vector<8x8x8xf32> to vector<8x1x8xf32>
    %303 = vector.shape_cast %302 : vector<8x1x8xf32> to vector<8x8xf32>
    %304 = vector.extract_strided_slice %291 {offsets = [0, 6, 0], sizes = [8, 1, 8], strides = [1, 1, 1]} : vector<8x8x8xf32> to vector<8x1x8xf32>
    %305 = vector.shape_cast %304 : vector<8x1x8xf32> to vector<8x8xf32>
    %306 = vector.extract_strided_slice %291 {offsets = [0, 7, 0], sizes = [8, 1, 8], strides = [1, 1, 1]} : vector<8x8x8xf32> to vector<8x1x8xf32>
    %307 = vector.shape_cast %306 : vector<8x1x8xf32> to vector<8x8xf32>
    %308 = tpu.concatenate %293, %295, %297, %299, %301, %303, %305, %307 in 1 : vector<8x8xf32>, vector<8x8xf32>, vector<8x8xf32>, vector<8x8xf32>, vector<8x8xf32>, vector<8x8xf32>, vector<8x8xf32>, vector<8x8xf32> -> vector<8x64xf32>
    %c0_297 = arith.constant 0 : index
    %c3_298 = arith.constant 3 : index
    %c0_299 = arith.constant 0 : index
    %c0_300 = arith.constant 0 : index
    %309 = vector.load %arg7[%c0_297, %c3_298, %c0_299, %c0_300] : memref<1x4x8x64xf32, #tpu.memory_space<vmem>>, vector<1x1x8x64xf32>
    %310 = vector.shape_cast %309 : vector<1x1x8x64xf32> to vector<8x64xf32>
    %311 = vector.shape_cast %308 : vector<8x64xf32> to vector<1x1x8x64xf32>
    tpu.vector_store %arg7[%c0_297, %c3_298, %c0_299, %c0_300], %311 {strides = array<i32>} : memref<1x4x8x64xf32, #tpu.memory_space<vmem>>, vector<1x1x8x64xf32>,
    return
  }
  func.func @transform_0(%arg0: i32, %arg1: i32) -> (i32, i32, i32, i32) {
    %c0_i32 = arith.constant 0 : i32
    %c0_i32_0 = arith.constant 0 : i32
    %c0_i32_1 = arith.constant 0 : i32
    return %arg0, %arg1, %c0_i32, %c0_i32_0 : i32, i32, i32, i32
  }
  func.func @transform_1(%arg0: i32, %arg1: i32) -> (i32, i32, i32, i32) {
    %c4_i32 = arith.constant 4 : i32
    %0 = arith.muli %arg1, %c4_i32 : i32
    %c4_i32_0 = arith.constant 4 : i32
    %1 = arith.addi %0, %c4_i32_0 : i32
    %c0_i32 = arith.constant 0 : i32
    %2 = arith.addi %1, %c0_i32 : i32
    %c0_i32_1 = arith.constant 0 : i32
    %c0_i32_2 = arith.constant 0 : i32
    %c0_i32_3 = arith.constant 0 : i32
    return %arg0, %2, %c0_i32_1, %c0_i32_2 : i32, i32, i32, i32
  }
  func.func @transform_2(%arg0: i32, %arg1: i32) -> (i32, i32, i32, i32) {
    %c4_i32 = arith.constant 4 : i32
    %0 = arith.muli %arg1, %c4_i32 : i32
    %c4_i32_0 = arith.constant 4 : i32
    %1 = arith.addi %0, %c4_i32_0 : i32
    %c1_i32 = arith.constant 1 : i32
    %2 = arith.addi %1, %c1_i32 : i32
    %c0_i32 = arith.constant 0 : i32
    %c0_i32_1 = arith.constant 0 : i32
    %c0_i32_2 = arith.constant 0 : i32
    return %arg0, %2, %c0_i32, %c0_i32_1 : i32, i32, i32, i32
  }
  func.func @transform_3(%arg0: i32, %arg1: i32) -> (i32, i32, i32) {
    %c0_i32 = arith.constant 0 : i32
    %c0_i32_0 = arith.constant 0 : i32
    %c0_i32_1 = arith.constant 0 : i32
    %c0_i32_2 = arith.constant 0 : i32
    return %c0_i32, %c0_i32_0, %c0_i32_1 : i32, i32, i32
  }
  func.func @transform_4(%arg0: i32, %arg1: i32) -> (i32, i32) {
    %c0_i32 = arith.constant 0 : i32
    %c0_i32_0 = arith.constant 0 : i32
    %c0_i32_1 = arith.constant 0 : i32
    return %c0_i32, %c0_i32_0 : i32, i32
  }
  func.func @transform_5(%arg0: i32, %arg1: i32) -> (i32, i32, i32, i32) {
    %c0_i32 = arith.constant 0 : i32
    %c0_i32_0 = arith.constant 0 : i32
    %c0_i32_1 = arith.constant 0 : i32
    return %arg0, %arg1, %c0_i32, %c0_i32_0 : i32, i32, i32, i32
  }
}

</mosaic_0001>

<bundles_post_ra>
// kernel: tpu_custom_call.1
= control target key start
LH: loop header
LB: loop body
LE: loop exit
PB: predicated region body
PF: predicated region fallthrough
CT: control target
= control target key end

     0   :  { %10 = vsyncpa [#allocation3], 0  ;;  %s8699_s0 = inlined_call_operand.vmem [shape: bf16[2,6,80,12], index: 0, kind: input, shape index: {}]   ;;  %s8700_s1 = inlined_call_operand.vmem [shape: bf16[2,6,80,12], index: 1, kind: input, shape index: {}]   ;;  %s8701_s2 = inlined_call_operand.vmem [shape: bf16[2,6,80,12], index: 2, kind: input, shape index: {}]   ;;  %s8702_s3 = inlined_call_operand.vmem [shape: bf16[9,12,8], index: 3, kind: input, shape index: {}]   ;;  %s8703_s4 = inlined_call_operand.vmem [shape: f32[1,8], index: 4, kind: input, shape index: {}]   ;;  %s8704_s5 = inlined_call_operand.hbm [shape: f32[2,4,8,64], index: 5, kind: output, shape index: {}]  }
   0x1   :  { %12 = vsyncpa [#allocation3 + $0x1], 0  ;;  %s7441_s18 = smov 0   ;;  %s7443_s19 = smov 0  }
   0x2   :  { %s7445_s20 = smov 0   ;;  %s7447_s21 = smov 0  }
   0x3   :  { %s7449_s22 = smov 0   ;;  %s7451_s23 = smov 0  }
   0x4 LB: > { %s5606_s24 = sadd.s32 4294967295, %s7400_s23   ;;  %s5607_s25 = sadd.s32 4294967294, %s7400_s23   ;;  %s7400_s23 = sphi %s7451_s23, %s18_s23   ;;  %s7396_s22 = sphi %s7449_s22, %s8711_s22   ;;  %s7392_s21 = sphi %s7447_s21, %s8710_s21   ;;  %s7388_s20 = sphi %s7445_s20, %s8709_s20   ;;  %s7384_s19 = sphi %s7443_s19, %s8708_s19   ;;  %s7380_s18 = sphi %s7441_s18, %s8707_s18  }
   0x5   : > { %s30_s26 = sadd.s32 1, %s7396_s22  ;;  %s173_s27 = sadd.s32 1, %s7388_s20 }
   0x6   : > { %p32_p0 = scmp.ge.s32.totalorder %s30_s26, 2  ;;  %p183_p1 = scmp.ne.s32.totalorder %s7388_s20, %s7384_s19 }
   0x7   : > { %p184_p2 = scmp.eq.s32.totalorder %s5606_s24, 1  ;;  %p189_p3 = scmp.ne.s32.totalorder %s7384_s19, %s7380_s18 }
   0x8   : > { %s8713_s26 = smov (%p32_p0, %s30_s26), 0  ;;  %p190_p5 = scmp.eq.s32.totalorder %s5607_s25, 1 }
   0x9   : > { %p7481_p4 = por %p184_p2, %p183_p1  ;;  %s168_s29 = ssub.s32 %s7396_s22, %s8713_s26 }
   0xa   : > { %p5610_p6 = scmp.ge.s32.totalorder %s7400_s23, 1  ;;  %p171_p7 = scmp.eq.s32.totalorder %s168_s29, 0 }
   0xb   : > { %p7488_p8 = por %p190_p5, %p189_p3  ;;  %p270_p9 = scmp.lt.s32.totalorder %s7400_s23, 3 }
   0xc   : > { %s7494_s6 = scalar_select %p171_p7, %s7388_s20, %s173_s27  }
   0xd   : > { %p271_p10 = pnand %p5610_p6, %p270_p9 }
   0xe   : > { %vm434_vm0 = vcmask (!%p271_p10), 1045504   ;;  %p336_p11 = scmp.lt.s32.totalorder (!%p271_p10), %s7392_s21, 1  ;;  %v7142_v0 = vld [vmem:[%s8702_s3] sm:$0x3f] (!%p271_p10)   ;;  %v7146_v3 = vld [vmem:[%s8702_s3 + $0x8] sm:$0x3f] (!%p271_p10)  }
   0xf   : > { %274 = sbr.rel (%p271_p10) target bundleno = 706 (0x2c2), region = 40  ;;  %v7143_v1 = vld [vmem:[%s8702_s3] sm:$0x3f] (!%p271_p10)   ;;  %7049 = vmatprep.subr.msk.bf16.mxu1 (!%p271_p10), %vm434_vm0, %v7142_v0  ;;  %v1725_v2 = vsel (!%p271_p10), %vm434_vm0, %v7142_v0, 0  ;;  %v7149_v5 = vld [vmem:[%s8702_s3 + $0x8] sm:$0x3f] (!%p271_p10)  }
  0x10   : > { %7040 = vmatprep.subr.msk.bf16.mxu0 (!%p271_p10), %vm434_vm0, %v7143_v1  ;;  %6483 = vmatpush3.bf16.msra.mxu1 (!%p271_p10), %v1725_v2  ;;  %v436_v4 = vsel (!%p271_p10), %vm434_vm0, %v7143_v1, 0  ;;  %vm421_vm1 = vcmask (!%p271_p10), 97280   ;;  %v7156_v8 = vld [vmem:[%s8702_s3 + $0x10] sm:$0x3f] (!%p271_p10)   ;;  %v560_v10 = vsel (!%p271_p10), %vm434_vm0, %v7149_v5, 0  ;;  %v1848_v12 = vsel (!%p271_p10), %vm434_vm0, %v7146_v3, 0 }
  0x11   : > { %6393 = vmatpush3.bf16.msra.mxu0 (!%p271_p10), %v436_v4  ;;  %7050 = vmatprep.subr.msk.bf16.mxu1 (!%p271_p10), %vm434_vm0, %v7146_v3  ;;  %v7159_v19 = vld [vmem:[%s8702_s3 + $0x10] sm:$0x3f] (!%p271_p10)   ;;  %v1971_v22 = vsel (!%p271_p10), %vm434_vm0, %v7156_v8, 0  ;;  %v7166_v26 = vld [vmem:[%s8702_s3 + $0x18] sm:$0x3f] (!%p271_p10)   ;;  %vm1514_vm2 = vcmask (!%p271_p10), 1041409  }
  0x12   : > { %7041 = vmatprep.subr.msk.bf16.mxu0 (!%p271_p10), %vm434_vm0, %v7149_v5  ;;  %v684_v24 = vsel (!%p271_p10), %vm434_vm0, %v7159_v19, 0  ;;  %v7169_v27 = vld [vmem:[%s8702_s3 + $0x18] sm:$0x3f] (!%p271_p10)   ;;  %v2094_v34 = vsel (!%p271_p10), %vm434_vm0, %v7166_v26, 0  ;;  %v7176_v38 = vld [vmem:[%s8702_s3 + $0x20] sm:$0x3f] (!%p271_p10)  }
  0x13   : > { %v809_v36 = vsel (!%p271_p10), %vm434_vm0, %v7169_v27, 0  ;;  %v7179_v39 = vld [vmem:[%s8702_s3 + $0x20] sm:$0x3f] (!%p271_p10)   ;;  %v2217_v46 = vsel (!%p271_p10), %vm434_vm0, %v7176_v38, 0  ;;  %v7186_v50 = vld [vmem:[%s8702_s3 + $0x28] sm:$0x3f] (!%p271_p10)  }
  0x14   : > { %v933_v48 = vsel (!%p271_p10), %vm434_vm0, %v7179_v39, 0  ;;  %v7189_v51 = vld [vmem:[%s8702_s3 + $0x28] sm:$0x3f] (!%p271_p10)   ;;  %v2340_v58 = vsel (!%p271_p10), %vm434_vm0, %v7186_v50, 0  ;;  %v7196_v62 = vld [vmem:[%s8702_s3 + $0x30] sm:$0x3f] (!%p271_p10)  }
  0x15   : > { %v1057_v60 = vsel (!%p271_p10), %vm434_vm0, %v7189_v51, 0  ;;  %v7199_v63 = vld [vmem:[%s8702_s3 + $0x30] sm:$0x3f] (!%p271_p10)   ;;  %vm1517_vm3 = vcmask (!%p271_p10), 1042434   ;;  %vm1520_vm4 = vcmask (!%p271_p10), 1043459   ;;  %vm1526_vm5 = vcmask (!%p271_p10), 1045509  }
  0x16   : > { %s337_s11 = scalar_select %p336_p11, %s7392_s21, 1  ;;  %vm1523_vm6 = vcmask 1044484   ;;  %vm1529_vm7 = vcmask 1046534   ;;  %vm1532_vm8 = vcmask 1047559   ;;  %vm1654_vm9 = vcmask 64512  }
  0x17   : > { %s7404_s16 = smov 8   ;;  %s7405_s17 = smov 24   ;;  %vm1656_vm10 = vcmask 130048   ;;  %vm1658_vm11 = vcmask 195584   ;;  %vm1660_vm12 = vcmask 261120   ;;  %vm1662_vm13 = vcmask 326656  }
  0x18   : > { %s7511_s14 = smul.u32 240, %s337_s11  ;;  %s7406_s24 = smov 32   ;;  %vm1664_vm14 = vcmask 392192   ;;  %vm1666_vm15 = vcmask 457728  }
  0x19   : > { %s7407_s27 = smov 48   ;;  %s6211_s11 = sshll.u32 %s7392_s21, 9 }
  0x1a   : > { %s7521_s25 = scalar_lea.vmem %s8699_s0, %s7511_s14  ;;  %s6208_s7 = sadd.s32 160, %s7511_s14 }
  0x1b   : > { %v7144_v6 = vld [vmem:[%s7521_s25] sm:$0xff]   ;;  %v7145_v7 = vld [vmem:[%s7521_s25 + $0x28] sm:$0xff]   ;;  %v7148_v11 = vld [vmem:[%s7521_s25 + $0x30] sm:$0xff]   ;;  %s7727_s15 = scalar_lea.vmem %s8700_s1, %s6208_s7  ;;  %s6210_s29 = sadd.s32 200, %s7511_s14 }
  0x1c   : > { %6394 = vmatprep.mubr.msk.bf16.mxu0 %vm421_vm1, %v7144_v6  ;;  %v7147_v9 = vld [vmem:[%s7521_s25 + $0x8] sm:$0xff]   ;;  %6484 = vmatprep.mubr.msk.bf16.mxu1 %vm421_vm1, %v7145_v7  ;;  %v7150_v13 = vld [vmem:[%s7521_s25 + $0x10] sm:$0xff]   ;;  %v7151_v14 = vld [vmem:[%s7521_s25 + $0x38] sm:$0xff]   ;;  %v2464_v6 = vsel %vm434_vm0, %v7196_v62, 0  ;;  %s7778_s9 = scalar_lea.vmem %s8701_s2, %s6210_s29  ;;  %s7408_s29 = smov 56  }
  0x1d   : > { %6395 = vmatmul.mubr.msk.bf16.vlgmr.msra.gmra.mrb[0].mxu0 %vm421_vm1, %v7147_v9  ;;  %6485 = vmatmul.mubr.msk.bf16.vlgmr.msra.gmra.mrb[0].mxu1 %vm421_vm1, %v7148_v11  ;;  %v7152_v15 = vld [vmem:[%s7521_s25 + $0x18] sm:$0xff]   ;;  %v7153_v16 = vld [vmem:[%s7521_s25 + $0x40] sm:$0xff]   ;;  %v7155_v18 = vld [vmem:[%s7521_s25 + $0x2c] sm:$0xff]   ;;  %s327_s7 = sand.u32 1, %s7384_s19   ;;  %s8645_s13 = scalar_lea.hbm %s8704_s5, %s6211_s11 }
  0x1e   : > { %6403 = vmatpush3.bf16.msra.mxu0 %v560_v10  ;;  %6493 = vmatpush3.bf16.msra.mxu1 %v1848_v12  ;;  %v7154_v17 = vld [vmem:[%s7521_s25 + $0x4] sm:$0xff]   ;;  %v7157_v20 = vld [vmem:[%s7521_s25 + $0xc] sm:$0xff]   ;;  %v7158_v21 = vld [vmem:[%s7521_s25 + $0x34] sm:$0xff]   ;;  %s5611_s8 = sshll.u32 %s327_s7, 5  ;;  %s8652_s21 = scalar_lea.sflag [#allocation3], %s327_s7 }
  0x1f   : > { %6398 = vmatprep.mubr.msk.bf16.mxu0 %vm421_vm1, %v7150_v13  ;;  %6488 = vmatprep.mubr.msk.bf16.mxu1 %vm421_vm1, %v7151_v14  ;;  %v7160_v23 = vld [vmem:[%s7521_s25 + $0x14] sm:$0xff]   ;;  %v7161_v25 = vld [vmem:[%s7521_s25 + $0x3c] sm:$0xff]   ;;  %v7163_v29 = vld [vmem:[%s7521_s25 + $0x44] sm:$0xff]  }
  0x20   : > { %7051 = vmatprep.subr.msk.bf16.mxu1 %vm434_vm0, %v7156_v8  ;;  %7042 = vmatprep.subr.msk.bf16.mxu0 %vm434_vm0, %v7159_v19  ;;  %v7162_v28 = vld [vmem:[%s7521_s25 + $0x1c] sm:$0xff]   ;;  %v7164_v30 = vld [vmem:[%s7521_s25 + $0x8] sm:$0xff]   ;;  %v7165_v31 = vld [vmem:[%s7521_s25 + $0x30] sm:$0xff]   ;;  %v1182_v8 = vsel %vm434_vm0, %v7199_v63, 0 }
  0x21   : > { %v7167_v32 = vld [vmem:[%s7521_s25 + $0x10] sm:$0xff]   ;;  %v7168_v33 = vld [vmem:[%s7521_s25 + $0x38] sm:$0xff]   ;;  %v7171_v37 = vld [vmem:[%s7521_s25 + $0x40] sm:$0xff]  }
  0x22   : > { %v7170_v35 = vld [vmem:[%s7521_s25 + $0x18] sm:$0xff]   ;;  %v7172_v40 = vld [vmem:[%s7521_s25 + $0x20] sm:$0xff]   ;;  %v7173_v41 = vld [vmem:[%s7521_s25 + $0x48] sm:$0xff]  }
  0x23   : > { %v7174_v42 = vld [vmem:[%s7521_s25 + $0x28] sm:$0xff]   ;;  %v7175_v43 = vld [vmem:[%s7521_s25 + $0x50] sm:$0xff]   ;;  %v7178_v45 = vld [vmem:[%s7521_s25 + $0x58] sm:$0xff]  }
  0x24   : > { %v7177_v44 = vld [vmem:[%s7521_s25 + $0x30] sm:$0xff]   ;;  %v7180_v47 = vld [vmem:[%s7521_s25 + $0x38] sm:$0xff]   ;;  %v7181_v49 = vld [vmem:[%s7521_s25 + $0x60] sm:$0xff]  }
  0x25   : > { %6399 = vmatmul.mubr.msk.bf16.gmra.mrb[4].mxu0 %vm421_vm1, %v7152_v15  ;;  %6489 = vmatmul.mubr.msk.bf16.gmra.mrb[4].mxu1 %vm421_vm1, %v7153_v16  ;;  %v7182_v52 = vld [vmem:[%s7521_s25 + $0x40] sm:$0xff]   ;;  %v7183_v53 = vld [vmem:[%s7521_s25 + $0x68] sm:$0xff]   ;;  %v7185_v55 = vld [vmem:[%s7521_s25 + $0x54] sm:$0xff]  }
  0x26   : > { %6404 = vmatprep.mubr.msk.bf16.mxu0 %vm421_vm1, %v7154_v17  ;;  %6494 = vmatprep.mubr.msk.bf16.mxu1 %vm421_vm1, %v7155_v18  ;;  %v7184_v54 = vld [vmem:[%s7521_s25 + $0x2c] sm:$0xff]   ;;  %v7187_v56 = vld [vmem:[%s7521_s25 + $0x34] sm:$0xff]   ;;  %v7188_v57 = vld [vmem:[%s7521_s25 + $0x5c] sm:$0xff]  }
  0x27   : > { %v7190_v59 = vld [vmem:[%s7521_s25 + $0x3c] sm:$0xff]   ;;  %v7191_v61 = vld [vmem:[%s7521_s25 + $0x64] sm:$0xff]   ;;  %v7193_v1 = vld [vmem:[%s7521_s25 + $0x6c] sm:$0xff]  }
  0x28   : > { %v7192_v0 = vld [vmem:[%s7521_s25 + $0x44] sm:$0xff]   ;;  %v7194_v2 = vld [vmem:[%s7521_s25 + $0x30] sm:$0xff]   ;;  %v7195_v3 = vld [vmem:[%s7521_s25 + $0x58] sm:$0xff]  }
  0x29   : > { %v7197_v4 = vld [vmem:[%s7521_s25 + $0x38] sm:$0xff]   ;;  %v7198_v5 = vld [vmem:[%s7521_s25 + $0x60] sm:$0xff]   ;;  %v7201_v9 = vld [vmem:[%s7521_s25 + $0x68] sm:$0xff]  }
  0x2a   : > { %v7200_v7 = vld [vmem:[%s7521_s25 + $0x40] sm:$0xff]   ;;  %v7206_v10 = vld [vmem:[%s8702_s3 + $0x38] sm:$0x3f]   ;;  %v7202_v12 = vld [vmem:[%s7521_s25 + $0x48] sm:$0xff]  }
  0x2b   : > { %v7209_v11 = vld [vmem:[%s8702_s3 + $0x38] sm:$0x3f]   ;;  %v7203_v13 = vld [vmem:[%s7521_s25 + $0x70] sm:$0xff]   ;;  %v7208_v17 = vld [vmem:[%s7521_s25 + $0x80] sm:$0xff]   ;;  %v2587_v18 = vsel %vm434_vm0, %v7206_v10, 0 }
  0x2c   : > { %v7204_v14 = vld [vmem:[%s7521_s25 + $0x50] sm:$0xff]   ;;  %v7205_v15 = vld [vmem:[%s7521_s25 + $0x78] sm:$0xff]   ;;  %v7210_v19 = vld [vmem:[%s7521_s25 + $0x60] sm:$0xff]  }
  0x2d   : > { %6405 = vmatmul.mubr.msk.bf16.vlgmr.msra.gmra.mrb[0].mxu0 %vm421_vm1, %v7157_v20  ;;  %6495 = vmatmul.mubr.msk.bf16.vlgmr.msra.gmra.mrb[0].mxu1 %vm421_vm1, %v7158_v21  ;;  %v7207_v16 = vld [vmem:[%s7521_s25 + $0x58] sm:$0xff]   ;;  %v1306_v20 = vsel %vm434_vm0, %v7209_v11, 0  ;;  %v7211_v21 = vld [vmem:[%s7521_s25 + $0x88] sm:$0xff]  }
  0x2e   : > { %6413 = vmatpush3.bf16.msra.mxu0 %v684_v24  ;;  %6503 = vmatpush3.bf16.msra.mxu1 %v1971_v22  ;;  %v7216_v22 = vld [vmem:[%s8702_s3 + $0x40] sm:$0x3f]   ;;  %v7212_v24 = vld [vmem:[%s7521_s25 + $0x68] sm:$0xff]  }
  0x2f   : > { %6408 = vmatprep.mubr.msk.bf16.mxu0 %vm421_vm1, %v7160_v23  ;;  %6498 = vmatprep.mubr.msk.bf16.mxu1 %vm421_vm1, %v7161_v25  ;;  %v7219_v23 = vld [vmem:[%s8702_s3 + $0x40] sm:$0x3f]   ;;  %v7213_v25 = vld [vmem:[%s7521_s25 + $0x90] sm:$0xff]  }
  0x30   : > { %7052 = vmatprep.subr.msk.bf16.mxu1 %vm434_vm0, %v7166_v26  ;;  %7043 = vmatprep.subr.msk.bf16.mxu0 %vm434_vm0, %v7169_v27  ;;  %v7214_v26 = vld [vmem:[%s7521_s25 + $0x54] sm:$0xff]   ;;  %v7215_v27 = vld [vmem:[%s7521_s25 + $0x7c] sm:$0xff]  }
  0x35   : > { %6409 = vmatmul.mubr.msk.bf16.gmra.mrb[4].mxu0 %vm421_vm1, %v7162_v28  ;;  %6499 = vmatmul.mubr.msk.bf16.gmra.mrb[4].mxu1 %vm421_vm1, %v7163_v29  ;;  %v7217_v28 = vld [vmem:[%s7521_s25 + $0x5c] sm:$0xff]   ;;  %v7218_v29 = vld [vmem:[%s7521_s25 + $0x84] sm:$0xff]  }
  0x36   : > { %6414 = vmatprep.mubr.msk.bf16.mxu0 %vm421_vm1, %v7164_v30  ;;  %6504 = vmatprep.mubr.msk.bf16.mxu1 %vm421_vm1, %v7165_v31  ;;  %v2710_v30 = vsel %vm434_vm0, %v7216_v22, 0  ;;  %v7220_v31 = vld [vmem:[%s7521_s25 + $0x64] sm:$0xff]  }
  0x3d   : > { %6415 = vmatmul.mubr.msk.bf16.vlgmr.msra.gmra.mrb[0].mxu0 %vm421_vm1, %v7167_v32  ;;  %6505 = vmatmul.mubr.msk.bf16.vlgmr.msra.gmra.mrb[0].mxu1 %vm421_vm1, %v7168_v33  ;;  %v1430_v32 = vsel %vm434_vm0, %v7219_v23, 0  ;;  %v7221_v33 = vld [vmem:[%s7521_s25 + $0x8c] sm:$0xff]  }
  0x3e   : > { %6423 = vmatpush3.bf16.msra.mxu0 %v809_v36  ;;  %6513 = vmatpush3.bf16.msra.mxu1 %v2094_v34  ;;  %v7226_v34 = vld [vmem:[%s8702_s3] sm:$0x3f]   ;;  %v7222_v36 = vld [vmem:[%s7521_s25 + $0x6c] sm:$0xff]  }
  0x3f   : > { %6418 = vmatprep.mubr.msk.bf16.mxu0 %vm421_vm1, %v7170_v35  ;;  %6508 = vmatprep.mubr.msk.bf16.mxu1 %vm421_vm1, %v7171_v37  ;;  %v7229_v35 = vld [vmem:[%s8702_s3] sm:$0x3f]   ;;  %v7223_v37 = vld [vmem:[%s7521_s25 + $0x94] sm:$0xff]  }
  0x40   : > { %7053 = vmatprep.subr.msk.bf16.mxu1 %vm434_vm0, %v7176_v38  ;;  %7044 = vmatprep.subr.msk.bf16.mxu0 %vm434_vm0, %v7179_v39  ;;  %v7224_v38 = vld [vmem:[%s7521_s25 + $0x58] sm:$0xff]   ;;  %v7225_v39 = vld [vmem:[%s7521_s25 + $0x80] sm:$0xff]  }
  0x45   : > { %6419 = vmatmul.mubr.msk.bf16.gmra.mrb[4].mxu0 %vm421_vm1, %v7172_v40  ;;  %6509 = vmatmul.mubr.msk.bf16.gmra.mrb[4].mxu1 %vm421_vm1, %v7173_v41  ;;  %v7227_v40 = vld [vmem:[%s7521_s25 + $0x60] sm:$0xff]   ;;  %v7228_v41 = vld [vmem:[%s7521_s25 + $0x88] sm:$0xff]  }
  0x46   : > { %6424 = vmatprep.mubr.msk.bf16.mxu0 %vm421_vm1, %v7174_v42  ;;  %6514 = vmatprep.mubr.msk.bf16.mxu1 %vm421_vm1, %v7175_v43  ;;  %v4256_v42 = vsel %vm434_vm0, %v7226_v34, 0  ;;  %v7230_v43 = vld [vmem:[%s7521_s25 + $0x68] sm:$0xff]  }
  0x4d   : > { %6425 = vmatmul.mubr.msk.bf16.vlgmr.msra.gmra.mrb[0].mxu0 %vm421_vm1, %v7177_v44  ;;  %6515 = vmatmul.mubr.msk.bf16.vlgmr.msra.gmra.mrb[0].mxu1 %vm421_vm1, %v7178_v45  ;;  %v2991_v44 = vsel %vm434_vm0, %v7229_v35, 0  ;;  %v7231_v45 = vld [vmem:[%s7521_s25 + $0x90] sm:$0xff]  }
  0x4e   : > { %6433 = vmatpush3.bf16.msra.mxu0 %v933_v48  ;;  %6523 = vmatpush3.bf16.msra.mxu1 %v2217_v46  ;;  %v7236_v46 = vld [vmem:[%s8702_s3 + $0x8] sm:$0x3f]   ;;  %v7232_v48 = vld [vmem:[%s7521_s25 + $0x70] sm:$0xff]  }
  0x4f   : > { %6428 = vmatprep.mubr.msk.bf16.mxu0 %vm421_vm1, %v7180_v47  ;;  %6518 = vmatprep.mubr.msk.bf16.mxu1 %vm421_vm1, %v7181_v49  ;;  %v7239_v47 = vld [vmem:[%s8702_s3 + $0x8] sm:$0x3f]   ;;  %v7233_v49 = vld [vmem:[%s7521_s25 + $0x98] sm:$0xff]  }
  0x50   : > { %7054 = vmatprep.subr.msk.bf16.mxu1 %vm434_vm0, %v7186_v50  ;;  %7045 = vmatprep.subr.msk.bf16.mxu0 %vm434_vm0, %v7189_v51  ;;  %v7234_v50 = vld [vmem:[%s7521_s25 + $0x50] sm:$0xff]   ;;  %v7235_v51 = vld [vmem:[%s7521_s25 + $0x78] sm:$0xff]  }
  0x55   : > { %6429 = vmatmul.mubr.msk.bf16.gmra.mrb[4].mxu0 %vm421_vm1, %v7182_v52  ;;  %6519 = vmatmul.mubr.msk.bf16.gmra.mrb[4].mxu1 %vm421_vm1, %v7183_v53  ;;  %v7237_v52 = vld [vmem:[%s7521_s25 + $0x58] sm:$0xff]   ;;  %v7238_v53 = vld [vmem:[%s7521_s25 + $0x80] sm:$0xff]  }
  0x56   : > { %6434 = vmatprep.mubr.msk.bf16.mxu0 %vm421_vm1, %v7184_v54  ;;  %6524 = vmatprep.mubr.msk.bf16.mxu1 %vm421_vm1, %v7185_v55  ;;  %v4379_v54 = vsel %vm434_vm0, %v7236_v46, 0  ;;  %v7240_v55 = vld [vmem:[%s7521_s25 + $0x60] sm:$0xff]  }
  0x5d   : > { %6435 = vmatmul.mubr.msk.bf16.vlgmr.msra.gmra.mrb[0].mxu0 %vm421_vm1, %v7187_v56  ;;  %6525 = vmatmul.mubr.msk.bf16.vlgmr.msra.gmra.mrb[0].mxu1 %vm421_vm1, %v7188_v57  ;;  %v3114_v56 = vsel %vm434_vm0, %v7239_v47, 0  ;;  %v7241_v57 = vld [vmem:[%s7521_s25 + $0x88] sm:$0xff]  }
  0x5e   : > { %6443 = vmatpush3.bf16.msra.mxu0 %v1057_v60  ;;  %6533 = vmatpush3.bf16.msra.mxu1 %v2340_v58  ;;  %v7246_v58 = vld [vmem:[%s8702_s3 + $0x10] sm:$0x3f]   ;;  %v7242_v60 = vld [vmem:[%s7521_s25 + $0x68] sm:$0xff]  }
  0x5f   : > { %6438 = vmatprep.mubr.msk.bf16.mxu0 %vm421_vm1, %v7190_v59  ;;  %6528 = vmatprep.mubr.msk.bf16.mxu1 %vm421_vm1, %v7191_v61  ;;  %v7249_v59 = vld [vmem:[%s8702_s3 + $0x10] sm:$0x3f]  }
  0x60   : > { %7055 = vmatprep.subr.msk.bf16.mxu1 %vm434_vm0, %v7196_v62  ;;  %7046 = vmatprep.subr.msk.bf16.mxu0 %vm434_vm0, %v7199_v63  ;;  %v7243_v61 = vld [vmem:[%s7521_s25 + $0x90] sm:$0xff]   ;;  %v7245_v63 = vld [vmem:[%s7521_s25 + $0x7c] sm:$0xff]  }
  0x61   : > { %v7244_v62 = vld [vmem:[%s7521_s25 + $0x54] sm:$0xff]  }
  0x65   : > { %6439 = vmatmul.mubr.msk.bf16.gmra.mrb[4].mxu0 %vm421_vm1, %v7192_v0  ;;  %6529 = vmatmul.mubr.msk.bf16.gmra.mrb[4].mxu1 %vm421_vm1, %v7193_v1  ;;  %v7247_v0 = vld [vmem:[%s7521_s25 + $0x5c] sm:$0xff]   ;;  %v7248_v1 = vld [vmem:[%s7521_s25 + $0x84] sm:$0xff]  }
  0x66   : > { %6444 = vmatprep.mubr.msk.bf16.mxu0 %vm421_vm1, %v7194_v2  ;;  %6534 = vmatprep.mubr.msk.bf16.mxu1 %vm421_vm1, %v7195_v3  ;;  %v4502_v2 = vsel %vm434_vm0, %v7246_v58, 0  ;;  %v7250_v3 = vld [vmem:[%s7521_s25 + $0x64] sm:$0xff]  }
  0x6d   : > { %6445 = vmatmul.mubr.msk.bf16.vlgmr.msra.gmra.mrb[0].mxu0 %vm421_vm1, %v7197_v4  ;;  %6535 = vmatmul.mubr.msk.bf16.vlgmr.msra.gmra.mrb[0].mxu1 %vm421_vm1, %v7198_v5  ;;  %v3237_v4 = vsel %vm434_vm0, %v7249_v59, 0  ;;  %v7251_v5 = vld [vmem:[%s7521_s25 + $0x8c] sm:$0xff]  }
  0x6e   : > { %6453 = vmatpush3.bf16.msra.mxu0 %v1182_v8  ;;  %6543 = vmatpush3.bf16.msra.mxu1 %v2464_v6  ;;  %v7256_v6 = vld [vmem:[%s8702_s3 + $0x18] sm:$0x3f]   ;;  %v7252_v8 = vld [vmem:[%s7521_s25 + $0x6c] sm:$0xff]  }
  0x6f   : > { %6448 = vmatprep.mubr.msk.bf16.mxu0 %vm421_vm1, %v7200_v7  ;;  %6538 = vmatprep.mubr.msk.bf16.mxu1 %vm421_vm1, %v7201_v9  ;;  %v7259_v7 = vld [vmem:[%s8702_s3 + $0x18] sm:$0x3f]  }
  0x70   : > { %7056 = vmatprep.subr.msk.bf16.mxu1 %vm434_vm0, %v7206_v10  ;;  %7047 = vmatprep.subr.msk.bf16.mxu0 %vm434_vm0, %v7209_v11  ;;  %v7253_v9 = vld [vmem:[%s7521_s25 + $0x94] sm:$0xff]   ;;  %v7255_v11 = vld [vmem:[%s7521_s25 + $0x80] sm:$0xff]  }
  0x71   : > { %v7254_v10 = vld [vmem:[%s7521_s25 + $0x58] sm:$0xff]  }
  0x75   : > { %6449 = vmatmul.mubr.msk.bf16.gmra.mrb[4].mxu0 %vm421_vm1, %v7202_v12  ;;  %6539 = vmatmul.mubr.msk.bf16.gmra.mrb[4].mxu1 %vm421_vm1, %v7203_v13  ;;  %v7257_v12 = vld [vmem:[%s7521_s25 + $0x60] sm:$0xff]   ;;  %v7258_v13 = vld [vmem:[%s7521_s25 + $0x88] sm:$0xff]  }
  0x76   : > { %6454 = vmatprep.mubr.msk.bf16.mxu0 %vm421_vm1, %v7204_v14  ;;  %6544 = vmatprep.mubr.msk.bf16.mxu1 %vm421_vm1, %v7205_v15  ;;  %v3360_v14 = vsel %vm434_vm0, %v7259_v7, 0  ;;  %v7260_v15 = vld [vmem:[%s7521_s25 + $0x68] sm:$0xff]  }
  0x7d   : > { %6455 = vmatmul.mubr.msk.bf16.vlgmr.msra.gmra.mrb[0].mxu0 %vm421_vm1, %v7207_v16  ;;  %6545 = vmatmul.mubr.msk.bf16.vlgmr.msra.gmra.mrb[0].mxu1 %vm421_vm1, %v7208_v17  ;;  %v4625_v16 = vsel %vm434_vm0, %v7256_v6, 0  ;;  %v7261_v17 = vld [vmem:[%s7521_s25 + $0x90] sm:$0xff]  }
  0x7e   : > { %6463 = vmatpush3.bf16.msra.mxu0 %v1306_v20  ;;  %6553 = vmatpush3.bf16.msra.mxu1 %v2587_v18  ;;  %v7266_v18 = vld [vmem:[%s8702_s3 + $0x20] sm:$0x3f]   ;;  %v7262_v20 = vld [vmem:[%s7521_s25 + $0x70] sm:$0xff]  }
  0x7f   : > { %6458 = vmatprep.mubr.msk.bf16.mxu0 %vm421_vm1, %v7210_v19  ;;  %6548 = vmatprep.mubr.msk.bf16.mxu1 %vm421_vm1, %v7211_v21  ;;  %v7269_v19 = vld [vmem:[%s8702_s3 + $0x20] sm:$0x3f]   ;;  %v7263_v21 = vld [vmem:[%s7521_s25 + $0x98] sm:$0xff]  }
  0x80   : > { %7057 = vmatprep.subr.msk.bf16.mxu1 %vm434_vm0, %v7216_v22  ;;  %7048 = vmatprep.subr.msk.bf16.mxu0 %vm434_vm0, %v7219_v23  ;;  %v7264_v22 = vld [vmem:[%s7521_s25 + $0x78] sm:$0xff]   ;;  %v7265_v23 = vld [vmem:[%s7727_s15] sm:$0xff]  }
  0x85   : > { %6459 = vmatmul.mubr.msk.bf16.gmra.mrb[4].mxu0 %vm421_vm1, %v7212_v24  ;;  %6549 = vmatmul.mubr.msk.bf16.gmra.mrb[4].mxu1 %vm421_vm1, %v7213_v25  ;;  %v7267_v24 = vld [vmem:[%s7521_s25 + $0x80] sm:$0xff]   ;;  %v7268_v25 = vld [vmem:[%s7727_s15 + $0x8] sm:$0xff]  }
  0x86   : > { %6464 = vmatprep.mubr.msk.bf16.mxu0 %vm421_vm1, %v7214_v26  ;;  %6554 = vmatprep.mubr.msk.bf16.mxu1 %vm421_vm1, %v7215_v27  ;;  %v3483_v26 = vsel %vm434_vm0, %v7269_v19, 0  ;;  %v7270_v27 = vld [vmem:[%s7521_s25 + $0x88] sm:$0xff]  }
  0x8d   : > { %6465 = vmatmul.mubr.msk.bf16.vlgmr.msra.gmra.mrb[0].mxu0 %vm421_vm1, %v7217_v28  ;;  %6555 = vmatmul.mubr.msk.bf16.vlgmr.msra.gmra.mrb[0].mxu1 %vm421_vm1, %v7218_v29  ;;  %v4748_v28 = vsel %vm434_vm0, %v7266_v18, 0  ;;  %v7271_v29 = vld [vmem:[%s7727_s15 + $0x10] sm:$0xff]  }
  0x8e   : > { %6473 = vmatpush3.bf16.msra.mxu0 %v1430_v32  ;;  %6563 = vmatpush3.bf16.msra.mxu1 %v2710_v30  ;;  %v7276_v30 = vld [vmem:[%s8702_s3 + $0x28] sm:$0x3f]   ;;  %v7272_v32 = vld [vmem:[%s7521_s25 + $0x90] sm:$0xff]  }
  0x8f   : > { %6468 = vmatprep.mubr.msk.bf16.mxu0 %vm421_vm1, %v7220_v31  ;;  %6558 = vmatprep.mubr.msk.bf16.mxu1 %vm421_vm1, %v7221_v33  ;;  %v7279_v31 = vld [vmem:[%s8702_s3 + $0x28] sm:$0x3f]   ;;  %v7273_v33 = vld [vmem:[%s7727_s15 + $0x18] sm:$0xff]  }
  0x90   : > { %7067 = vmatprep.subr.msk.bf16.mxu1 %vm434_vm0, %v7226_v34  ;;  %7058 = vmatprep.subr.msk.bf16.mxu0 %vm434_vm0, %v7229_v35  ;;  %v7274_v34 = vld [vmem:[%s7521_s25 + $0x7c] sm:$0xff]   ;;  %v7275_v35 = vld [vmem:[%s7727_s15 + $0x4] sm:$0xff]  }
  0x95   : > { %6469 = vmatmul.mubr.msk.bf16.gmra.mrb[4].mxu0 %vm421_vm1, %v7222_v36  ;;  %6559 = vmatmul.mubr.msk.bf16.gmra.mrb[4].mxu1 %vm421_vm1, %v7223_v37  ;;  %v7277_v36 = vld [vmem:[%s7521_s25 + $0x84] sm:$0xff]   ;;  %v7278_v37 = vld [vmem:[%s7727_s15 + $0xc] sm:$0xff]  }
  0x96   : > { %6474 = vmatprep.mubr.msk.bf16.mxu0 %vm421_vm1, %v7224_v38  ;;  %6564 = vmatprep.mubr.msk.bf16.mxu1 %vm421_vm1, %v7225_v39  ;;  %v3606_v38 = vsel %vm434_vm0, %v7279_v31, 0  ;;  %v7280_v39 = vld [vmem:[%s7521_s25 + $0x8c] sm:$0xff]  }
  0x9d   : > { %6475 = vmatmul.mubr.msk.bf16.vlgmr.msra.gmra.mrb[0].mxu0 %vm421_vm1, %v7227_v40  ;;  %6565 = vmatmul.mubr.msk.bf16.vlgmr.msra.gmra.mrb[0].mxu1 %vm421_vm1, %v7228_v41  ;;  %v4871_v40 = vsel %vm434_vm0, %v7276_v30, 0  ;;  %v7281_v41 = vld [vmem:[%s7727_s15 + $0x14] sm:$0xff]  }
  0x9e   : > { %6573 = vmatpush3.bf16.msra.mxu0 %v2991_v44  ;;  %6663 = vmatpush3.bf16.msra.mxu1 %v4256_v42  ;;  %v7286_v42 = vld [vmem:[%s8702_s3 + $0x30] sm:$0x3f]  }
  0x9f   : > { %6478 = vmatprep.mubr.msk.bf16.mxu0 %vm421_vm1, %v7230_v43  ;;  %6568 = vmatprep.mubr.msk.bf16.mxu1 %vm421_vm1, %v7231_v45  ;;  %v7289_v43 = vld [vmem:[%s8702_s3 + $0x30] sm:$0x3f]   ;;  %v7283_v45 = vld [vmem:[%s7727_s15 + $0x1c] sm:$0xff]  }
  0xa0   : > { %7068 = vmatprep.subr.msk.bf16.mxu1 %vm434_vm0, %v7236_v46  ;;  %7059 = vmatprep.subr.msk.bf16.mxu0 %vm434_vm0, %v7239_v47  ;;  %v7282_v44 = vld [vmem:[%s7521_s25 + $0x94] sm:$0xff]   ;;  %v7284_v46 = vld [vmem:[%s7521_s25 + $0x80] sm:$0xff]   ;;  %v7285_v47 = vld [vmem:[%s7727_s15 + $0x8] sm:$0xff]  }
  0xa5   : > { %6479 = vmatmul.mubr.msk.bf16.gmra.mrb[4].mxu0 %vm421_vm1, %v7232_v48  ;;  %6569 = vmatmul.mubr.msk.bf16.gmra.mrb[4].mxu1 %vm421_vm1, %v7233_v49  ;;  %v7287_v48 = vld [vmem:[%s7521_s25 + $0x88] sm:$0xff]   ;;  %v7288_v49 = vld [vmem:[%s7727_s15 + $0x10] sm:$0xff]  }
  0xa6   : > { %6574 = vmatprep.mubr.msk.bf16.mxu0 %vm421_vm1, %v7234_v50  ;;  %6664 = vmatprep.mubr.msk.bf16.mxu1 %vm421_vm1, %v7235_v51  ;;  %v3729_v50 = vsel %vm434_vm0, %v7289_v43, 0  ;;  %v7290_v51 = vld [vmem:[%s7521_s25 + $0x90] sm:$0xff]  }
  0xad   : > { %6575 = vmatmul.mubr.msk.bf16.vlgmr.msra.gmra.mrb[8].mxu0 %vm421_vm1, %v7237_v52  ;;  %6665 = vmatmul.mubr.msk.bf16.vlgmr.msra.gmra.mrb[8].mxu1 %vm421_vm1, %v7238_v53  ;;  %v4994_v52 = vsel %vm434_vm0, %v7286_v42, 0  ;;  %v7291_v53 = vld [vmem:[%s7727_s15 + $0x18] sm:$0xff]  }
  0xae   : > { %6583 = vmatpush3.bf16.msra.mxu0 %v3114_v56  ;;  %6673 = vmatpush3.bf16.msra.mxu1 %v4379_v54  ;;  %v7296_v54 = vld [vmem:[%s8702_s3 + $0x38] sm:$0x3f]  }
  0xaf   : > { %6578 = vmatprep.mubr.msk.bf16.mxu0 %vm421_vm1, %v7240_v55  ;;  %6668 = vmatprep.mubr.msk.bf16.mxu1 %vm421_vm1, %v7241_v57  ;;  %v7299_v55 = vld [vmem:[%s8702_s3 + $0x38] sm:$0x3f]   ;;  %v7293_v57 = vld [vmem:[%s7727_s15 + $0x20] sm:$0xff]  }
  0xb0   : > { %7069 = vmatprep.subr.msk.bf16.mxu1 %vm434_vm0, %v7246_v58  ;;  %7060 = vmatprep.subr.msk.bf16.mxu0 %vm434_vm0, %v7249_v59  ;;  %v7292_v56 = vld [vmem:[%s7521_s25 + $0x98] sm:$0xff]   ;;  %v7294_v58 = vld [vmem:[%s7727_s15] sm:$0xff]   ;;  %s8414_s25 = scalar_lea.vmem [#allocation2], %s5611_s8 }
  0xb1   : > { %v7295_v59 = vld [vmem:[%s7778_s9] sm:$0xff]   ;;  %s5482_s10 = sshll.u32 %s8414_s25, 4  ;;  %s8638_s10 = int_to_ptr.vmem [resolvable:$true] %s5482_s10 }
  0xb5   : > { %6579 = vmatmul.mubr.msk.bf16.gmra.mrb[12].mxu0 %vm421_vm1, %v7242_v60  ;;  %6669 = vmatmul.mubr.msk.bf16.gmra.mrb[12].mxu1 %vm421_vm1, %v7243_v61  ;;  %v7297_v60 = vld [vmem:[%s7727_s15 + $0x8] sm:$0xff]  }
  0xb6   : > { %6584 = vmatprep.mubr.msk.bf16.mxu0 %vm421_vm1, %v7244_v62  ;;  %6674 = vmatprep.mubr.msk.bf16.mxu1 %vm421_vm1, %v7245_v63  ;;  %v7298_v61 = vld [vmem:[%s7778_s9 + $0x8] sm:$0xff]   ;;  %v3852_v62 = vsel %vm434_vm0, %v7299_v55, 0  ;;  %v7300_v63 = vld [vmem:[%s7727_s15 + $0x10] sm:$0xff]  }
  0xbd   : > { %6585 = vmatmul.mubr.msk.bf16.vlgmr.msra.gmra.mrb[8].mxu0 %vm421_vm1, %v7247_v0  ;;  %6675 = vmatmul.mubr.msk.bf16.vlgmr.msra.gmra.mrb[8].mxu1 %vm421_vm1, %v7248_v1  ;;  %v5117_v0 = vsel %vm434_vm0, %v7296_v54, 0  ;;  %v7301_v1 = vld [vmem:[%s7778_s9 + $0x10] sm:$0xff]  }
  0xbe   : > { %6593 = vmatpush3.bf16.msra.mxu0 %v3237_v4  ;;  %6683 = vmatpush3.bf16.msra.mxu1 %v4502_v2  ;;  %v7306_v2 = vld [vmem:[%s8702_s3 + $0x40] sm:$0x3f]   ;;  %v7302_v4 = vld [vmem:[%s7727_s15 + $0x18] sm:$0xff]  }
  0xbf   : > { %6588 = vmatprep.mubr.msk.bf16.mxu0 %vm421_vm1, %v7250_v3  ;;  %6678 = vmatprep.mubr.msk.bf16.mxu1 %vm421_vm1, %v7251_v5  ;;  %v7309_v3 = vld [vmem:[%s8702_s3 + $0x40] sm:$0x3f]   ;;  %v7303_v5 = vld [vmem:[%s7778_s9 + $0x18] sm:$0xff]  }
  0xc0   : > { %7070 = vmatprep.subr.msk.bf16.mxu1 %vm434_vm0, %v7256_v6  ;;  %7061 = vmatprep.subr.msk.bf16.mxu0 %vm434_vm0, %v7259_v7  ;;  %v7304_v6 = vld [vmem:[%s7727_s15 + $0x4] sm:$0xff]  }
  0xc1   : > { %v7305_v7 = vld [vmem:[%s7778_s9 + $0x4] sm:$0xff]  }
  0xc5   : > { %6589 = vmatmul.mubr.msk.bf16.gmra.mrb[12].mxu0 %vm421_vm1, %v7252_v8  ;;  %6679 = vmatmul.mubr.msk.bf16.gmra.mrb[12].mxu1 %vm421_vm1, %v7253_v9  ;;  %v7307_v8 = vld [vmem:[%s7727_s15 + $0xc] sm:$0xff]  }
  0xc6   : > { %6594 = vmatprep.mubr.msk.bf16.mxu0 %vm421_vm1, %v7254_v10  ;;  %6684 = vmatprep.mubr.msk.bf16.mxu1 %vm421_vm1, %v7255_v11  ;;  %v7308_v9 = vld [vmem:[%s7778_s9 + $0xc] sm:$0xff]   ;;  %v3975_v10 = vsel %vm434_vm0, %v7309_v3, 0  ;;  %v7310_v11 = vld [vmem:[%s7727_s15 + $0x14] sm:$0xff]  }
  0xcd   : > { %6595 = vmatmul.mubr.msk.bf16.vlgmr.msra.gmra.mrb[8].mxu0 %vm421_vm1, %v7257_v12  ;;  %6685 = vmatmul.mubr.msk.bf16.vlgmr.msra.gmra.mrb[8].mxu1 %vm421_vm1, %v7258_v13  ;;  %v5240_v12 = vsel %vm434_vm0, %v7306_v2, 0  ;;  %v7311_v13 = vld [vmem:[%s7778_s9 + $0x14] sm:$0xff]  }
  0xce   : > { %6603 = vmatpush3.bf16.msra.mxu0 %v3360_v14  ;;  %6693 = vmatpush3.bf16.msra.mxu1 %v4625_v16  ;;  %v7312_v14 = vld [vmem:[%s7727_s15 + $0x1c] sm:$0xff]   ;;  %v7314_v16 = vld [vmem:[%s7727_s15 + $0x8] sm:$0xff]  }
  0xcf   : > { %6598 = vmatprep.mubr.msk.bf16.mxu0 %vm421_vm1, %v7260_v15  ;;  %6688 = vmatprep.mubr.msk.bf16.mxu1 %vm421_vm1, %v7261_v17  ;;  %v7313_v15 = vld [vmem:[%s7778_s9 + $0x1c] sm:$0xff]   ;;  %v7315_v17 = vld [vmem:[%s7778_s9 + $0x8] sm:$0xff]  }
  0xd0   : > { %7071 = vmatprep.subr.msk.bf16.mxu1 %vm434_vm0, %v7266_v18  ;;  %7062 = vmatprep.subr.msk.bf16.mxu0 %vm434_vm0, %v7269_v19  ;;  %v7316_v18 = vld [vmem:[%s7727_s15 + $0x10] sm:$0xff]  }
  0xd1   : > { %v7317_v19 = vld [vmem:[%s7778_s9 + $0x10] sm:$0xff]  }
  0xd5   : > { %6599 = vmatmul.mubr.msk.bf16.gmra.mrb[12].mxu0 %vm421_vm1, %v7262_v20  ;;  %6689 = vmatmul.mubr.msk.bf16.gmra.mrb[12].mxu1 %vm421_vm1, %v7263_v21  ;;  %v7318_v20 = vld [vmem:[%s7727_s15 + $0x18] sm:$0xff]  }
  0xd6   : > { %6604 = vmatprep.mubr.msk.bf16.mxu0 %vm421_vm1, %v7264_v22  ;;  %6694 = vmatprep.mubr.msk.bf16.mxu1 %vm421_vm1, %v7265_v23  ;;  %v7319_v21 = vld [vmem:[%s7778_s9 + $0x18] sm:$0xff]   ;;  %v7320_v22 = vld [vmem:[%s7727_s15 + $0x20] sm:$0xff]   ;;  %s7402_s15 = smov 40  }
  0xd7   : > { %v7321_v23 = vld [vmem:[%s7778_s9 + $0x20] sm:$0xff]   ;;  %s7403_s9 = smov 16  }
  0xdd   : > { %6605 = vmatmul.mubr.msk.bf16.vlgmr.msra.gmra.mrb[8].mxu0 %vm421_vm1, %v7267_v24  ;;  %6695 = vmatmul.mubr.msk.bf16.vlgmr.msra.gmra.mrb[8].mxu1 %vm421_vm1, %v7268_v25  ;;  %v7989_v24 = vld [vmem:[%s8703_s4] ss:$0 sm:$0xff] }
  0xde   : > { %6613 = vmatpush3.bf16.msra.mxu0 %v3483_v26  ;;  %6703 = vmatpush3.bf16.msra.mxu1 %v4748_v28 }
  0xdf   : > { %6608 = vmatprep.mubr.msk.bf16.mxu0 %vm421_vm1, %v7270_v27  ;;  %6698 = vmatprep.mubr.msk.bf16.mxu1 %vm421_vm1, %v7271_v29 }
  0xe0   : > { %7072 = vmatprep.subr.msk.bf16.mxu1 %vm434_vm0, %v7276_v30  ;;  %7063 = vmatprep.subr.msk.bf16.mxu0 %vm434_vm0, %v7279_v31 }
  0xe5   : > { %6609 = vmatmul.mubr.msk.bf16.gmra.mrb[12].mxu0 %vm421_vm1, %v7272_v32  ;;  %6699 = vmatmul.mubr.msk.bf16.gmra.mrb[12].mxu1 %vm421_vm1, %v7273_v33 }
  0xe6   : > { %6614 = vmatprep.mubr.msk.bf16.mxu0 %vm421_vm1, %v7274_v34  ;;  %6704 = vmatprep.mubr.msk.bf16.mxu1 %vm421_vm1, %v7275_v35 }
  0xed   : > { %6615 = vmatmul.mubr.msk.bf16.vlgmr.msra.gmra.mrb[8].mxu0 %vm421_vm1, %v7277_v36  ;;  %6705 = vmatmul.mubr.msk.bf16.vlgmr.msra.gmra.mrb[8].mxu1 %vm421_vm1, %v7278_v37 }
  0xee   : > { %6623 = vmatpush3.bf16.msra.mxu0 %v3606_v38  ;;  %6713 = vmatpush3.bf16.msra.mxu1 %v4871_v40 }
  0xef   : > { %6618 = vmatprep.mubr.msk.bf16.mxu0 %vm421_vm1, %v7280_v39  ;;  %6708 = vmatprep.mubr.msk.bf16.mxu1 %vm421_vm1, %v7281_v41 }
  0xf0   : > { %7073 = vmatprep.subr.msk.bf16.mxu1 %vm434_vm0, %v7286_v42  ;;  %7064 = vmatprep.subr.msk.bf16.mxu0 %vm434_vm0, %v7289_v43 }
  0xf5   : > { %6619 = vmatmul.mubr.msk.bf16.gmra.mrb[12].mxu0 %vm421_vm1, %v7282_v44  ;;  %6709 = vmatmul.mubr.msk.bf16.gmra.mrb[12].mxu1 %vm421_vm1, %v7283_v45 }
  0xf6   : > { %6624 = vmatprep.mubr.msk.bf16.mxu0 %vm421_vm1, %v7284_v46  ;;  %6714 = vmatprep.mubr.msk.bf16.mxu1 %vm421_vm1, %v7285_v47 }
  0xfd   : > { %6625 = vmatmul.mubr.msk.bf16.vlgmr.msra.gmra.mrb[8].mxu0 %vm421_vm1, %v7287_v48  ;;  %6715 = vmatmul.mubr.msk.bf16.vlgmr.msra.gmra.mrb[8].mxu1 %vm421_vm1, %v7288_v49 }
  0xfe   : > { %6633 = vmatpush3.bf16.msra.mxu0 %v3729_v50  ;;  %6723 = vmatpush3.bf16.msra.mxu1 %v4994_v52 }
  0xff   : > { %6628 = vmatprep.mubr.msk.bf16.mxu0 %vm421_vm1, %v7290_v51  ;;  %6718 = vmatprep.mubr.msk.bf16.mxu1 %vm421_vm1, %v7291_v53 }
 0x100   : > { %7074 = vmatprep.subr.msk.bf16.mxu1 %vm434_vm0, %v7296_v54  ;;  %7065 = vmatprep.subr.msk.bf16.mxu0 %vm434_vm0, %v7299_v55 }
 0x105   : > { %6629 = vmatmul.mubr.msk.bf16.gmra.mrb[12].mxu0 %vm421_vm1, %v7292_v56  ;;  %6719 = vmatmul.mubr.msk.bf16.gmra.mrb[12].mxu1 %vm421_vm1, %v7293_v57 }
 0x106   : > { %6634 = vmatprep.mubr.msk.bf16.mxu0 %vm421_vm1, %v7294_v58  ;;  %6724 = vmatprep.mubr.msk.bf16.mxu1 %vm421_vm1, %v7295_v59 }
 0x10d   : > { %6635 = vmatmul.mubr.msk.bf16.vlgmr.msra.gmra.mrb[8].mxu0 %vm421_vm1, %v7297_v60  ;;  %6725 = vmatmul.mubr.msk.bf16.vlgmr.msra.gmra.mrb[8].mxu1 %vm421_vm1, %v7298_v61 }
 0x10e   : > { %6643 = vmatpush3.bf16.msra.mxu0 %v3852_v62  ;;  %6733 = vmatpush3.bf16.msra.mxu1 %v5117_v0 }
 0x10f   : > { %6638 = vmatprep.mubr.msk.bf16.mxu0 %vm421_vm1, %v7300_v63  ;;  %6728 = vmatprep.mubr.msk.bf16.mxu1 %vm421_vm1, %v7301_v1 }
 0x110   : > { %7075 = vmatprep.subr.msk.bf16.mxu1 %vm434_vm0, %v7306_v2  ;;  %7066 = vmatprep.subr.msk.bf16.mxu0 %vm434_vm0, %v7309_v3  ;;  %vm1668_vm0 = vcmask 523264  }
 0x115   : > { %6639 = vmatmul.mubr.msk.bf16.gmra.mrb[12].mxu0 %vm421_vm1, %v7302_v4  ;;  %6729 = vmatmul.mubr.msk.bf16.gmra.mrb[12].mxu1 %vm421_vm1, %v7303_v5 }
 0x116   : > { %6644 = vmatprep.mubr.msk.bf16.mxu0 %vm421_vm1, %v7304_v6  ;;  %6734 = vmatprep.mubr.msk.bf16.mxu1 %vm421_vm1, %v7305_v7 }
 0x11d   : > { %6645 = vmatmul.mubr.msk.bf16.vlgmr.msra.gmra.mrb[8].mxu0 %vm421_vm1, %v7307_v8  ;;  %6735 = vmatmul.mubr.msk.bf16.vlgmr.msra.gmra.mrb[8].mxu1 %vm421_vm1, %v7308_v9 }
 0x11e   : > { %6653 = vmatpush3.bf16.msra.mxu0 %v3975_v10  ;;  %6743 = vmatpush3.bf16.msra.mxu1 %v5240_v12 }
 0x11f   : > { %6648 = vmatprep.mubr.msk.bf16.mxu0 %vm421_vm1, %v7310_v11  ;;  %6738 = vmatprep.mubr.msk.bf16.mxu1 %vm421_vm1, %v7311_v13 }
 0x125   : > { %6649 = vmatmul.mubr.msk.bf16.gmra.mrb[12].mxu0 %vm421_vm1, %v7312_v14  ;;  %6739 = vmatmul.mubr.msk.bf16.gmra.mrb[12].mxu1 %vm421_vm1, %v7313_v15 }
 0x126   : > { %6654 = vmatprep.mubr.msk.bf16.mxu0 %vm421_vm1, %v7314_v16  ;;  %6744 = vmatprep.mubr.msk.bf16.mxu1 %vm421_vm1, %v7315_v17 }
 0x12d   : > { %6655 = vmatmul.mubr.msk.bf16.vlgmr.msra.gmra.mrb[8].mxu0 %vm421_vm1, %v7316_v18  ;;  %6745 = vmatmul.mubr.msk.bf16.vlgmr.msra.gmra.mrb[8].mxu1 %vm421_vm1, %v7317_v19 }
 0x12e   : > { %6658 = vmatprep.mubr.msk.bf16.mxu0 %vm421_vm1, %v7318_v20  ;;  %6748 = vmatprep.mubr.msk.bf16.mxu1 %vm421_vm1, %v7319_v21 }
 0x135   : > { %6659 = vmatmul.mubr.msk.bf16.gmra.mrb[12].mxu0 %vm421_vm1, %v7320_v22  ;;  %6749 = vmatmul.mubr.msk.bf16.gmra.mrb[12].mxu1 %vm421_vm1, %v7321_v23 }
 0x170   : > { %v6476_v25 = vpop.f32.mrb[0].mxu0  ;;  %v6566_v27 = vpop.f32.mrb[0].mxu1 }
 0x171   : > { %v7992_v26 = vadd.f32 %v6476_v25, %v7989_v24  ;;  %v1466_v28 = vpop.f32.mrb[1].mxu0  ;;  %v7995_v29 = vadd.f32 %v6566_v27, %v7989_v24  ;;  %v2746_v31 = vpop.f32.mrb[1].mxu1 }
 0x172   : > { %v7998_v30 = vadd.f32 %v7989_v24, %v1466_v28  ;;  %v6477_v32 = vpop.f32.mrb[2].mxu0  ;;  %v8001_v33 = vadd.f32 %v7989_v24, %v2746_v31  ;;  %v6567_v35 = vpop.f32.mrb[2].mxu1 }
 0x173   : > { %v8004_v34 = vadd.f32 %v6477_v32, %v7989_v24  ;;  %v1469_v36 = vpop.f32.mrb[3].mxu0  ;;  %v1606_v37 = vrot.slane %v7992_v26, 3  ;;  %v1537_v38 = vrot.slane %v7992_v26, 7  ;;  %v8009_v39 = vadd.f32 %v6567_v35, %v7989_v24  ;;  %v2749_v41 = vpop.f32.mrb[3].mxu1 }
 0x174   : > { %v8012_v40 = vadd.f32 %v7989_v24, %v1469_v36  ;;  %v2879_v42 = vrot.slane %v7995_v29, 3  ;;  %v1603_v43 = vrot.slane %v7998_v30, 5  ;;  %v8017_v44 = vadd.f32 %v7989_v24, %v2749_v41 }
 0x175   : > { %v2876_v45 = vrot.slane %v8001_v33, 5  ;;  %v1608_v46 = vrot.slane %v8004_v34, 2  ;;  %v2825_v47 = vrot.slane %v8001_v33, 2  ;;  %v2881_v48 = vrot.slane %v8009_v39, 2 }
 0x176   : > { %v1604_v49 = vrot.slane %v8012_v40, 4  ;;  %v2829_v50 = vrot.slane %v8009_v39, 7  ;;  %v1535_v51 = vrot.slane %v7998_v30, 1  ;;  %v2877_v52 = vrot.slane %v8017_v44, 4 }
 0x177   : > { %v2826_v53 = vrot.slane %v8017_v44, 1  ;;  %v1539_v54 = vrot.slane %v8004_v34, 6  ;;  %v2842_v55 = vrot.slane %v8001_v33, 3  ;;  %v2843_v59 = vrot.slane %v8017_v44, 2 }
 0x178   : > { %v6480_v56 = vpop.f32.mrb[4].mxu0  ;;  %v1605_v57 = vsel %vm1514_vm2, %v1604_v49, %v1603_v43  ;;  %v1536_v58 = vsel %vm1514_vm2, %v8012_v40, %v1535_v51  ;;  %v2845_v60 = vrot.slane %v7995_v29, 1  ;;  %v6570_v62 = vpop.f32.mrb[4].mxu1  ;;  %v2878_v0 = vsel %vm1514_vm2, %v2877_v52, %v2876_v45 }
 0x179   : > { %v8036_v61 = vadd.f32 %v6480_v56, %v7989_v24  ;;  %v1482_v63 = vpop.f32.mrb[5].mxu0  ;;  %v1607_v1 = vsel %vm1517_vm3, %v1606_v37, %v1605_v57  ;;  %v2827_v2 = vsel %vm1514_vm2, %v2826_v53, %v2825_v47  ;;  %v8042_v3 = vadd.f32 %v6570_v62, %v7989_v24  ;;  %v2762_v5 = vpop.f32.mrb[5].mxu1 }
 0x17a   : > { %v8045_v4 = vadd.f32 %v7989_v24, %v1482_v63  ;;  %v6481_v6 = vpop.f32.mrb[6].mxu0  ;;  %v2880_v7 = vsel %vm1517_vm3, %v2879_v42, %v2878_v0  ;;  %v1609_v8 = vsel %vm1520_vm4, %v1608_v46, %v1607_v1  ;;  %v8050_v9 = vadd.f32 %v7989_v24, %v2762_v5  ;;  %v6571_v11 = vpop.f32.mrb[6].mxu1 }
 0x17b   : > { %v8053_v10 = vadd.f32 %v6481_v6, %v7989_v24  ;;  %v1485_v12 = vpop.f32.mrb[7].mxu0  ;;  %v2882_v13 = vsel %vm1520_vm4, %v2881_v48, %v2880_v7  ;;  %v1613_v14 = vrot.slane %v8036_v61, 7  ;;  %v8058_v15 = vadd.f32 %v6571_v11, %v7989_v24  ;;  %v2765_v17 = vpop.f32.mrb[7].mxu1 }
 0x17c   : > { %v8061_v16 = vadd.f32 %v7989_v24, %v1485_v12  ;;  %v2886_v18 = vrot.slane %v8042_v3, 7  ;;  %v1610_v19 = vrot.slane %v8045_v4, 1  ;;  %v8066_v20 = vadd.f32 %v7989_v24, %v2765_v17 }
 0x17d   : > { %v2883_v21 = vrot.slane %v8050_v9, 1  ;;  %v1615_v22 = vrot.slane %v8053_v10, 6  ;;  %v2828_v23 = vsel %vm1517_vm3, %v7995_v29, %v2827_v2  ;;  %v2888_v25 = vrot.slane %v8058_v15, 6 }
 0x17e   : > { %v1611_v27 = vsel %vm1523_vm6, %v1610_v19, %v1609_v8  ;;  %v2830_v28 = vsel %vm1520_vm4, %v2829_v50, %v2828_v23  ;;  %v2831_v31 = vrot.slane %v8050_v9, 6  ;;  %v2833_v36 = vrot.slane %v8066_v20, 5 }
 0x17f   : > { %v2884_v32 = vsel %vm1523_vm6, %v2883_v21, %v2882_v13  ;;  %v1612_v35 = vsel %vm1526_vm5, %v8061_v16, %v1611_v27  ;;  %v2835_v37 = vrot.slane %v8042_v3, 4  ;;  %v2837_v45 = vrot.slane %v8058_v15, 3 }
 0x180   : > { %v2885_v41 = vsel %vm1526_vm5, %v8066_v20, %v2884_v32  ;;  %v1614_v42 = vsel %vm1529_vm7, %v1613_v14, %v1612_v35  ;;  %v2832_v43 = vsel %vm1523_vm6, %v2831_v31, %v2830_v28  ;;  %v1538_v49 = vsel %vm1517_vm3, %v1537_v38, %v1536_v58 }
 0x181   : > { %v2887_v46 = vsel %vm1529_vm7, %v2886_v18, %v2885_v41  ;;  %v1616_v47 = vsel %vm1532_vm8, %v1615_v22, %v1614_v42  ;;  %v2834_v48 = vsel %vm1526_vm5, %v2833_v36, %v2832_v43  ;;  %v1540_v52 = vsel %vm1520_vm4, %v1539_v54, %v1538_v49 }
 0x182   : > { %v2889_v50 = vsel %vm1532_vm8, %v2888_v25, %v2887_v46  ;;  %1617 = vrot.lane.b32.xlu0 %v1616_v47, %s7402_s15  ;;  %v2836_v51 = vsel %vm1529_vm7, %v2835_v37, %v2834_v48  ;;  %v1541_v53 = vrot.slane %v8045_v4, 5  ;;  %v1543_v57 = vrot.slane %v8061_v16, 4 }
 0x183   : > { %2890 = vrot.lane.b32.xlu1 %v2889_v50, %s7402_s15  ;;  %v2838_v56 = vsel %vm1532_vm8, %v2837_v45, %v2836_v51  ;;  %v1545_v62 = vrot.slane %v8036_v61, 3  ;;  %v1547_v38 = vrot.slane %v8053_v10, 2  ;;  %v2844_v63 = vsel %vm1514_vm2, %v2843_v59, %v2842_v55 }
 0x184   : > { %v1542_v58 = vsel %vm1523_vm6, %v1541_v53, %v1540_v52  ;;  %v2848_v0 = vrot.slane %v8050_v9, 7  ;;  %v2850_v54 = vrot.slane %v8066_v20, 6  ;;  %v2846_v2 = vsel %vm1517_vm3, %v2845_v60, %v2844_v63 }
 0x185   : > { %v1544_v1 = vsel %vm1526_vm5, %v1543_v57, %v1542_v58  ;;  %v2852_v5 = vrot.slane %v8042_v3, 5  ;;  %v2854_v6 = vrot.slane %v8058_v15, 4  ;;  %v2847_v8 = vsel %vm1520_vm4, %v8009_v39, %v2846_v2 }
 0x186   : > { %v1546_v7 = vsel %vm1529_vm7, %v1545_v62, %v1544_v1  ;;  %v2808_v11 = vrot.slane %v8001_v33, 1  ;;  %v2810_v55 = vrot.slane %v7995_v29, 7  ;;  %v2849_v60 = vsel %vm1523_vm6, %v2848_v0, %v2847_v8 }
 0x187   : > { %2839 = vrot.lane.b32.xlu1 %v2838_v56, %s7403_s9  ;;  %v1548_v59 = vsel %vm1532_vm8, %v1547_v38, %v1546_v7  ;;  %v2812_v12 = vrot.slane %v8009_v39, 6  ;;  %v2814_v13 = vrot.slane %v8050_v9, 5  ;;  %v2851_v14 = vsel %vm1526_vm5, %v2850_v54, %v2849_v60 }
 0x188   : > { %1549 = vrot.lane.b32.xlu0 %v1548_v59, %s7404_s16  ;;  %v2809_v17 = vsel %vm1514_vm2, %v8017_v44, %v2808_v11  ;;  %v2816_v18 = vrot.slane %v8066_v20, 4  ;;  %v2818_v19 = vrot.slane %v8042_v3, 3  ;;  %v2853_v21 = vsel %vm1529_vm7, %v2852_v5, %v2851_v14 }
 0x189   : > { %v2811_v22 = vsel %vm1517_vm3, %v2810_v55, %v2809_v17  ;;  %v2820_v23 = vrot.slane %v8058_v15, 2  ;;  %v2859_v25 = vrot.slane %v8001_v33, 4  ;;  %v2855_v27 = vsel %vm1532_vm8, %v2854_v6, %v2853_v21 }
 0x18a   : > { %v2813_v28 = vsel %vm1520_vm4, %v2812_v12, %v2811_v22  ;;  %v2860_v31 = vrot.slane %v8017_v44, 3  ;;  %v2862_v32 = vrot.slane %v7995_v29, 2  ;;  %v2864_v36 = vrot.slane %v8009_v39, 1 }
 0x18b   : > { %2856 = vrot.lane.b32.xlu1 %v2855_v27, %s7405_s17  ;;  %v2815_v35 = vsel %vm1523_vm6, %v2814_v13, %v2813_v28  ;;  %v2867_v37 = vrot.slane %v8066_v20, 7  ;;  %v2869_v41 = vrot.slane %v8042_v3, 6  ;;  %v2871_v45 = vrot.slane %v8058_v15, 5 }
 0x18c   : > { %v2817_v42 = vsel %vm1526_vm5, %v2816_v18, %v2815_v35  ;;  %v2861_v43 = vsel %vm1514_vm2, %v2860_v31, %v2859_v25  ;;  %v1552_v46 = vrot.slane %v7998_v30, 2  ;;  %v1553_v49 = vrot.slane %v8012_v40, 1 }
 0x18d   : > { %v2819_v47 = vsel %vm1529_vm7, %v2818_v19, %v2817_v42  ;;  %v2863_v48 = vsel %vm1517_vm3, %v2862_v32, %v2861_v43  ;;  %v1556_v50 = vrot.slane %v8004_v34, 7  ;;  %v1558_v53 = vrot.slane %v8045_v4, 6 }
 0x18e   : > { %v2821_v51 = vsel %vm1532_vm8, %v2820_v23, %v2819_v47  ;;  %v2865_v52 = vsel %vm1520_vm4, %v2864_v36, %v2863_v48  ;;  %v1560_v56 = vrot.slane %v8061_v16, 5  ;;  %v1554_v62 = vsel %vm1514_vm2, %v1553_v49, %v1552_v46 }
 0x18f   : > { %2822 = vrot.lane.b32.xlu0 %v2821_v51, %s7404_s16  ;;  %v2866_v57 = vsel %vm1523_vm6, %v8050_v9, %v2865_v52  ;;  %v1562_v38 = vrot.slane %v8036_v61, 4  ;;  %v1564_v58 = vrot.slane %v8053_v10, 3  ;;  %v1555_v0 = vsel %vm1517_vm3, %v7992_v26, %v1554_v62 }
 0x190   : > { %v2868_v63 = vsel %vm1526_vm5, %v2867_v37, %v2866_v57  ;;  %v2893_v54 = vrot.slane %v8001_v33, 6  ;;  %v2894_v1 = vrot.slane %v8017_v44, 5  ;;  %v1557_v5 = vsel %vm1520_vm4, %v1556_v50, %v1555_v0 }
 0x191   : > { %v2870_v2 = vsel %vm1529_vm7, %v2869_v41, %v2868_v63  ;;  %v2896_v6 = vrot.slane %v7995_v29, 4  ;;  %v2898_v7 = vrot.slane %v8009_v39, 3  ;;  %v1559_v11 = vsel %vm1523_vm6, %v1558_v53, %v1557_v5 }
 0x192   : > { %v2872_v8 = vsel %vm1532_vm8, %v2871_v45, %v2870_v2  ;;  %v2895_v55 = vsel %vm1514_vm2, %v2894_v1, %v2893_v54  ;;  %v2900_v59 = vrot.slane %v8050_v9, 2  ;;  %v1561_v60 = vsel %vm1526_vm5, %v1560_v56, %v1559_v11 }
 0x193   : > { %2873 = vrot.lane.b32.xlu1 %v2872_v8, %s7406_s24  ;;  %v2897_v12 = vsel %vm1517_vm3, %v2896_v6, %v2895_v55  ;;  %v2902_v13 = vrot.slane %v8066_v20, 1  ;;  %v2905_v14 = vrot.slane %v8058_v15, 7  ;;  %v1563_v17 = vsel %vm1529_vm7, %v1562_v38, %v1561_v60 }
 0x194   : > { %v2899_v18 = vsel %vm1520_vm4, %v2898_v7, %v2897_v12  ;;  %v1569_v19 = vrot.slane %v7998_v30, 3  ;;  %v1570_v21 = vrot.slane %v8012_v40, 2  ;;  %v1565_v22 = vsel %vm1532_vm8, %v1564_v58, %v1563_v17 }
 0x195   : > { %v2901_v23 = vsel %vm1523_vm6, %v2900_v59, %v2899_v18  ;;  %v1572_v25 = vrot.slane %v7992_v26, 1  ;;  %v1575_v27 = vrot.slane %v8045_v4, 7  ;;  %1566 = vrot.lane.b32.xlu0 %v1565_v22, %s7403_s9  ;;  %v1577_v32 = vrot.slane %v8061_v16, 6 }
 0x196   : > { %v2903_v28 = vsel %vm1526_vm5, %v2902_v13, %v2901_v23  ;;  %v1571_v31 = vsel %vm1514_vm2, %v1570_v21, %v1569_v19  ;;  %v1579_v35 = vrot.slane %v8036_v61, 5  ;;  %v1581_v41 = vrot.slane %v8053_v10, 4 }
 0x197   : > { %v2904_v36 = vsel %vm1529_vm7, %v8042_v3, %v2903_v28  ;;  %v1573_v37 = vsel %vm1517_vm3, %v1572_v25, %v1571_v31  ;;  %v2910_v42 = vrot.slane %v8001_v33, 7  ;;  %v2911_v46 = vrot.slane %v8017_v44, 6 }
 0x198   : > { %v2906_v43 = vsel %vm1532_vm8, %v2905_v14, %v2904_v36  ;;  %v1574_v45 = vsel %vm1520_vm4, %v8004_v34, %v1573_v37  ;;  %v2913_v47 = vrot.slane %v7995_v29, 5  ;;  %v2915_v49 = vrot.slane %v8009_v39, 4 }
 0x199   : > { %2907 = vrot.lane.b32.xlu1 %v2906_v43, %s7407_s27  ;;  %v1576_v48 = vsel %vm1523_vm6, %v1575_v27, %v1574_v45  ;;  %v2917_v50 = vrot.slane %v8050_v9, 3  ;;  %v2919_v51 = vrot.slane %v8066_v20, 2  ;;  %v2912_v53 = vsel %vm1514_vm2, %v2911_v46, %v2910_v42 }
 0x19a   : > { %v1578_v52 = vsel %vm1526_vm5, %v1577_v32, %v1576_v48  ;;  %v2921_v56 = vrot.slane %v8042_v3, 1  ;;  %v1586_v57 = vrot.slane %v7998_v30, 4  ;;  %v2914_v38 = vsel %vm1517_vm3, %v2913_v47, %v2912_v53 }
 0x19b   : > { %v1580_v62 = vsel %vm1529_vm7, %v1579_v35, %v1578_v52  ;;  %v1587_v58 = vrot.slane %v8012_v40, 3  ;;  %v1589_v63 = vrot.slane %v7992_v26, 2  ;;  %v2916_v54 = vsel %vm1520_vm4, %v2915_v49, %v2914_v38 }
 0x19c   : > { %v1582_v0 = vsel %vm1532_vm8, %v1581_v41, %v1580_v62  ;;  %v1591_v1 = vrot.slane %v8004_v34, 1  ;;  %v1594_v2 = vrot.slane %v8061_v16, 7  ;;  %v2918_v5 = vsel %vm1523_vm6, %v2917_v50, %v2916_v54 }
 0x19d   : > { %1583 = vrot.lane.b32.xlu0 %v1582_v0, %s7405_s17  ;;  %v1588_v6 = vsel %vm1514_vm2, %v1587_v58, %v1586_v57  ;;  %v1596_v7 = vrot.slane %v8036_v61, 6  ;;  %v1598_v8 = vrot.slane %v8053_v10, 5  ;;  %v2920_v11 = vsel %vm1526_vm5, %v2919_v51, %v2918_v5 }
 0x19e   : > { %v1590_v55 = vsel %vm1517_vm3, %v1589_v63, %v1588_v6  ;;  %v1620_v59 = vrot.slane %v7998_v30, 6  ;;  %v1621_v60 = vrot.slane %v8012_v40, 5  ;;  %v2922_v12 = vsel %vm1529_vm7, %v2921_v56, %v2920_v11 }
 0x19f   : > { %v1592_v13 = vsel %vm1520_vm4, %v1591_v1, %v1590_v55  ;;  %v1623_v14 = vrot.slane %v7992_v26, 4  ;;  %v1625_v17 = vrot.slane %v8004_v34, 3  ;;  %v2923_v18 = vsel %vm1532_vm8, %v8058_v15, %v2922_v12 }
 0x1a0   : > { %v1593_v19 = vsel %vm1523_vm6, %v8045_v4, %v1592_v13  ;;  %v1622_v21 = vsel %vm1514_vm2, %v1621_v60, %v1620_v59  ;;  %v1627_v22 = vrot.slane %v8045_v4, 2  ;;  %2924 = vrot.lane.b32.xlu1 %v2923_v18, %s7408_s29  ;;  %v1629_v27 = vrot.slane %v8061_v16, 1 }
 0x1a1   : > { %v1595_v23 = vsel %vm1526_vm5, %v1594_v2, %v1593_v19  ;;  %v1624_v25 = vsel %vm1517_vm3, %v1623_v14, %v1622_v21  ;;  %v1632_v28 = vrot.slane %v8053_v10, 7  ;;  %v1637_v35 = vrot.slane %v7998_v30, 7 }
 0x1a2   : > { %v1597_v31 = vsel %vm1529_vm7, %v1596_v7, %v1595_v23  ;;  %v1626_v32 = vsel %vm1520_vm4, %v1625_v17, %v1624_v25  ;;  %v1638_v36 = vrot.slane %v8012_v40, 6  ;;  %v1640_v42 = vrot.slane %v7992_v26, 5 }
 0x1a3   : > { %v1599_v37 = vsel %vm1532_vm8, %v1598_v8, %v1597_v31  ;;  %v1628_v41 = vsel %vm1523_vm6, %v1627_v22, %v1626_v32  ;;  %v1642_v43 = vrot.slane %v8004_v34, 4  ;;  %v1644_v47 = vrot.slane %v8045_v4, 3 }
 0x1a4   : > { %1600 = vrot.lane.b32.xlu0 %v1599_v37, %s7406_s24  ;;  %v1630_v45 = vsel %vm1526_vm5, %v1629_v27, %v1628_v41  ;;  %v1639_v46 = vsel %vm1514_vm2, %v1638_v36, %v1637_v35  ;;  %v1646_v48 = vrot.slane %v8061_v16, 2  ;;  %v1513_v51 = vrot.slane %v8012_v40, 7 }
 0x1a5   : > { %v1631_v49 = vsel %vm1529_vm7, %v8036_v61, %v1630_v45  ;;  %v1641_v50 = vsel %vm1517_vm3, %v1640_v42, %v1639_v46  ;;  %v1648_v56 = vrot.slane %v8036_v61, 1  ;;  %v1516_v57 = vrot.slane %v7992_v26, 6 }
 0x1a6   : > { %v1633_v52 = vsel %vm1532_vm8, %v1632_v28, %v1631_v49  ;;  %v1643_v53 = vsel %vm1520_vm4, %v1642_v43, %v1641_v50  ;;  %v1515_v38 = vsel %vm1514_vm2, %v1513_v51, %v7998_v30  ;;  %v1519_v58 = vrot.slane %v8004_v34, 5 }
 0x1a7   : > { %v1645_v62 = vsel %vm1523_vm6, %v1644_v47, %v1643_v53  ;;  %v1522_v63 = vrot.slane %v8045_v4, 4  ;;  %v1518_v0 = vsel %vm1517_vm3, %v1516_v57, %v1515_v38  ;;  %v1525_v26 = vrot.slane %v8061_v16, 3 }
 0x1a8   : > { %1634 = vrot.lane.b32.xlu0 %v1633_v52, %s7407_s27  ;;  %v1647_v40 = vsel %vm1526_vm5, %v1646_v48, %v1645_v62  ;;  %v1521_v1 = vsel %vm1520_vm4, %v1519_v58, %v1518_v0  ;;  %v1528_v34 = vrot.slane %v8036_v61, 2  ;;  %v2793_v4 = vrot.slane %v8017_v44, 7 }
 0x1a9   : > { %v1649_v54 = vsel %vm1529_vm7, %v1648_v56, %v1647_v40  ;;  %v1524_v30 = vsel %vm1523_vm6, %v1522_v63, %v1521_v1  ;;  %v1531_v5 = vrot.slane %v8053_v10, 1  ;;  %v2795_v7 = vrot.slane %v7995_v29, 6 }
 0x1aa   : > { %v1650_v2 = vsel %vm1532_vm8, %v8053_v10, %v1649_v54  ;;  %v1527_v6 = vsel %vm1526_vm5, %v1525_v26, %v1524_v30  ;;  %v2799_v8 = vrot.slane %v8050_v9, 4  ;;  %v2794_v11 = vsel %vm1514_vm2, %v2793_v4, %v8001_v33 }
 0x1ab   : > { %v1530_v16 = vsel %vm1529_vm7, %v1528_v34, %v1527_v6  ;;  %v2797_v55 = vrot.slane %v8009_v39, 5  ;;  %v2801_v61 = vrot.slane %v8066_v20, 3  ;;  %v2796_v10 = vsel %vm1517_vm3, %v2795_v7, %v2794_v11 }
 0x1ac   : > { %1651 = vrot.lane.b32.xlu0 %v1650_v2, %s7408_s29  ;;  %v1533_v44 = vsel %vm1532_vm8, %v1531_v5, %v1530_v16  ;;  %v2803_v9 = vrot.slane %v8042_v3, 2  ;;  %v2805_v12 = vrot.slane %v8058_v15, 1 }
 0x1ad   : > { %v2798_v59 = vsel %vm1520_vm4, %v2797_v55, %v2796_v10 }
 0x1ae   : > { %v2800_v29 = vsel %vm1523_vm6, %v2799_v8, %v2798_v59 }
 0x1af   : > { %v2802_v60 = vsel %vm1526_vm5, %v2801_v61, %v2800_v29 }
 0x1b0   : > { %v2804_v33 = vsel %vm1529_vm7, %v2803_v9, %v2802_v60 }
 0x1b1   : > { %v2806_v39 = vsel %vm1532_vm8, %v2805_v12, %v2804_v33 }
 0x1f4   : > { %v8295_v20 = vpop.permute.xlu0 %1617 }
 0x1f5   : > { %v2891_v13 = vpop.permute.xlu1 %2890 }
 0x1f9   : > { %v2840_v14 = vpop.permute.xlu1 %2839 }
 0x1fa   : > { %v1550_v17 = vpop.permute.xlu0 %1549 }
 0x1fb   : > { %v1655_v15 = vsel %vm1654_vm9, %v1533_v44, %v1550_v17 }
 0x1fd   : > { %v2857_v18 = vpop.permute.xlu1 %2856 }
 0x200   : > { %v6656_v19 = vpop.f32.mrb[8].mxu0  ;;  %v6746_v22 = vpop.f32.mrb[8].mxu1 }
 0x201   : > { %v2823_v21 = vpop.permute.xlu0 %2822  ;;  %v8298_v3 = vadd.f32 %v6656_v19, %v7989_v24  ;;  %v8303_v25 = vadd.f32 %v6746_v22, %v7989_v24  ;;  %v4011_v27 = vpop.f32.mrb[9].mxu0 }
 0x202   : > { %v2927_v23 = vsel %vm1654_vm9, %v2806_v39, %v2823_v21  ;;  %v5276_v28 = vpop.f32.mrb[9].mxu1  ;;  %v8307_v32 = vadd.f32 %v7989_v24, %v4011_v27  ;;  %v6657_v36 = vpop.f32.mrb[10].mxu0 }
 0x203   : > { %v2928_v31 = vsel %vm1656_vm10, %v2927_v23, %v2840_v14  ;;  %v8310_v35 = vadd.f32 %v7989_v24, %v5276_v28  ;;  %v6747_v37 = vpop.f32.mrb[10].mxu1  ;;  %v4144_v41 = vrot.slane %v8298_v3, 3  ;;  %v8315_v43 = vadd.f32 %v6657_v36, %v7989_v24  ;;  %v4014_v46 = vpop.f32.mrb[11].mxu0 }
 0x204   : > { %v2929_v42 = vsel %vm1658_vm11, %v2928_v31, %v2857_v18  ;;  %v8318_v45 = vadd.f32 %v6747_v37, %v7989_v24  ;;  %v5279_v47 = vpop.f32.mrb[11].mxu1  ;;  %v5409_v48 = vrot.slane %v8303_v25, 3  ;;  %v8322_v50 = vadd.f32 %v7989_v24, %v4014_v46 }
 0x205   : > { %v2874_v49 = vpop.permute.xlu1 %2873  ;;  %v8325_v51 = vadd.f32 %v7989_v24, %v5279_v47  ;;  %v5406_v52 = vrot.slane %v8310_v35, 5  ;;  %v4141_v53 = vrot.slane %v8307_v32, 5  ;;  %v4146_v62 = vrot.slane %v8315_v43, 2 }
 0x206   : > { %v2930_v56 = vsel %vm1660_vm12, %v2929_v42, %v2874_v49  ;;  %v5411_v57 = vrot.slane %v8318_v45, 2  ;;  %v4073_v38 = vrot.slane %v8307_v32, 1  ;;  %v4142_v40 = vrot.slane %v8322_v50, 4 }
 0x207   : > { %v2931_v58 = vsel %vm1662_vm13, %v2930_v56, %v2891_v13  ;;  %v5407_v63 = vrot.slane %v8325_v51, 4  ;;  %v4075_v0 = vrot.slane %v8298_v3, 7  ;;  %v1567_v54 = vpop.permute.xlu0 %1566  ;;  %v4077_v2 = vrot.slane %v8315_v43, 6 }
 0x208   : > { %v6660_v1 = vpop.f32.mrb[12].mxu0  ;;  %v4074_v26 = vsel %vm1514_vm2, %v8322_v50, %v4073_v38  ;;  %v4090_v30 = vrot.slane %v8307_v32, 2  ;;  %v4091_v34 = vrot.slane %v8322_v50, 1  ;;  %v1657_v4 = vsel %vm1656_vm10, %v1655_v15, %v1567_v54  ;;  %v6750_v5 = vpop.f32.mrb[12].mxu1 }
 0x209   : > { %v8344_v6 = vadd.f32 %v6660_v1, %v7989_v24  ;;  %v4027_v7 = vpop.f32.mrb[13].mxu0  ;;  %v5408_v8 = vsel %vm1514_vm2, %v5407_v63, %v5406_v52  ;;  %v4143_v16 = vsel %vm1514_vm2, %v4142_v40, %v4141_v53  ;;  %v8349_v11 = vadd.f32 %v6750_v5, %v7989_v24  ;;  %v5292_v61 = vpop.f32.mrb[13].mxu1 }
 0x20a   : > { %v8352_v55 = vadd.f32 %v7989_v24, %v4027_v7  ;;  %v6661_v44 = vpop.f32.mrb[14].mxu0  ;;  %v5410_v10 = vsel %vm1517_vm3, %v5409_v48, %v5408_v8  ;;  %v4145_v59 = vsel %vm1517_vm3, %v4144_v41, %v4143_v16  ;;  %v8357_v9 = vadd.f32 %v7989_v24, %v5292_v61  ;;  %v6751_v12 = vpop.f32.mrb[14].mxu1 }
 0x20b   : > { %v2908_v29 = vpop.permute.xlu1 %2907  ;;  %v8360_v60 = vadd.f32 %v6661_v44, %v7989_v24  ;;  %v5412_v33 = vsel %vm1520_vm4, %v5411_v57, %v5410_v10  ;;  %v4147_v39 = vsel %vm1520_vm4, %v4146_v62, %v4145_v59  ;;  %v8367_v14 = vadd.f32 %v6751_v12, %v7989_v24  ;;  %v4030_v17 = vpop.f32.mrb[15].mxu0 }
 0x20c   : > { %v2932_v13 = vsel %vm1664_vm14, %v2931_v58, %v2908_v29  ;;  %v5295_v18 = vpop.f32.mrb[15].mxu1  ;;  %v5416_v19 = vrot.slane %v8349_v11, 7  ;;  %v4148_v21 = vrot.slane %v8352_v55, 1  ;;  %v8372_v22 = vadd.f32 %v7989_v24, %v4030_v17 }
 0x20d   : > { %v8375_v15 = vadd.f32 %v7989_v24, %v5295_v18  ;;  %v5413_v23 = vrot.slane %v8357_v9, 1  ;;  %v4151_v27 = vrot.slane %v8344_v6, 7  ;;  %v5418_v28 = vrot.slane %v8367_v14, 6 }
 0x20e   : > { %v4149_v31 = vsel %vm1523_vm6, %v4148_v21, %v4147_v39  ;;  %v4153_v36 = vrot.slane %v8360_v60, 6  ;;  %v4076_v37 = vsel %vm1517_vm3, %v4075_v0, %v4074_v26  ;;  %v4079_v47 = vrot.slane %v8352_v55, 5 }
 0x20f   : > { %v1584_v41 = vpop.permute.xlu0 %1583  ;;  %v5414_v42 = vsel %vm1523_vm6, %v5413_v23, %v5412_v33  ;;  %v4150_v24 = vsel %vm1526_vm5, %v8372_v22, %v4149_v31  ;;  %v4078_v46 = vsel %vm1520_vm4, %v4077_v2, %v4076_v37  ;;  %v4081_v53 = vrot.slane %v8372_v22, 4 }
 0x210   : > { %v1659_v48 = vsel %vm1658_vm11, %v1657_v4, %v1584_v41  ;;  %v5415_v49 = vsel %vm1526_vm5, %v8375_v15, %v5414_v42  ;;  %v4152_v52 = vsel %vm1529_vm7, %v4151_v27, %v4150_v24  ;;  %v4080_v62 = vsel %vm1523_vm6, %v4079_v47, %v4078_v46 }
 0x211   : > { %v5417_v56 = vsel %vm1529_vm7, %v5416_v19, %v5415_v49  ;;  %v4154_v57 = vsel %vm1532_vm8, %v4153_v36, %v4152_v52  ;;  %v4083_v38 = vrot.slane %v8344_v6, 3  ;;  %v4082_v63 = vsel %vm1526_vm5, %v4081_v53, %v4080_v62 }
 0x212   : > { %v5419_v58 = vsel %vm1532_vm8, %v5418_v28, %v5417_v56  ;;  %4155 = vrot.lane.b32.xlu0 %v4154_v57, %s7402_s15  ;;  %v4085_v40 = vrot.slane %v8360_v60, 2  ;;  %v4092_v0 = vsel %vm1514_vm2, %v4091_v34, %v4090_v30  ;;  %v2925_v54 = vpop.permute.xlu1 %2924  ;;  %v4094_v2 = vrot.slane %v8315_v43, 7 }
 0x213   : > { %5420 = vrot.lane.b32.xlu1 %v5419_v58, %s7402_s15  ;;  %v4084_v1 = vsel %vm1529_vm7, %v4083_v38, %v4082_v63  ;;  %v4093_v26 = vsel %vm1517_vm3, %v8298_v3, %v4092_v0  ;;  %v4096_v4 = vrot.slane %v8352_v55, 6  ;;  %v2933_v5 = vsel %vm1666_vm15, %v2932_v13, %v2925_v54  ;;  %s7322_s15 = scalar_lea.vmem %s8638_s10, 512 }
 0x214   : > { %v4086_v7 = vsel %vm1532_vm8, %v4085_v40, %v4084_v1  ;;  %v4098_v8 = vrot.slane %v8372_v22, 5  ;;  %v4100_v30 = vrot.slane %v8344_v6, 4  ;;  %5931 = vst.msk [vmem:[%s8414_s25 + $0x8] sm:$0xff] %vm1668_vm0, %v2933_v5  ;;  %v4095_v34 = vsel %vm1520_vm4, %v4094_v2, %v4093_v26  ;;  %p7323_p12 = scmp.ne.s32.totalorder %s8638_s10, %s7322_s15 }
 0x215   : > { %v4102_v16 = vrot.slane %v8360_v60, 3  ;;  %v5338_v61 = vrot.slane %v8310_v35, 1  ;;  %v5340_v44 = vrot.slane %v8303_v25, 7  ;;  %v4097_v59 = vsel %vm1523_vm6, %v4096_v4, %v4095_v34 }
 0x216   : > { %v1601_v10 = vpop.permute.xlu0 %1600  ;;  %v5342_v29 = vrot.slane %v8318_v45, 6  ;;  %v5344_v12 = vrot.slane %v8357_v9, 5  ;;  %v5346_v33 = vrot.slane %v8375_v15, 4  ;;  %v4099_v13 = vsel %vm1526_vm5, %v4098_v8, %v4097_v59  ;;  %p7324_p13 = pnand %p7323_p12, %p7481_p4 }
 0x217   : > { %v1661_v39 = vsel %vm1660_vm12, %v1659_v48, %v1601_v10  ;;  %4087 = vrot.lane.b32.xlu1 %v4086_v7, %s7404_s16  ;;  %v5339_v17 = vsel %vm1514_vm2, %v8325_v51, %v5338_v61  ;;  %v5348_v18 = vrot.slane %v8349_v11, 3  ;;  %v4101_v21 = vsel %vm1529_vm7, %v4100_v30, %v4099_v13 }
 0x218   : > { %v1663_v19 = vsel %vm1662_vm13, %v1661_v39, %v8295_v20  ;;  %v5341_v23 = vsel %vm1517_vm3, %v5340_v44, %v5339_v17  ;;  %v5350_v27 = vrot.slane %v8367_v14, 2  ;;  %v4103_v28 = vsel %vm1532_vm8, %v4102_v16, %v4101_v21  ;;  %p7325_p0 = pneg %p7324_p13 }
 0x219   : > { %v5343_v31 = vsel %vm1520_vm4, %v5342_v29, %v5341_v23  ;;  %v4107_v36 = vrot.slane %v8307_v32, 3  ;;  %v4108_v37 = vrot.slane %v8322_v50, 2  ;;  %4104 = vrot.lane.b32.xlu0 %v4103_v28, %s7403_s9  ;;  %v4110_v20 = vrot.slane %v8298_v3, 1 }
 0x21a   : > { %v1635_v41 = vpop.permute.xlu0 %1634  ;;  %v5345_v42 = vsel %vm1523_vm6, %v5344_v12, %v5343_v31  ;;  %v4113_v24 = vrot.slane %v8352_v55, 7  ;;  %v4115_v46 = vrot.slane %v8372_v22, 6  ;;  %v4117_v52 = vrot.slane %v8344_v6, 5 }
 0x21b   : > { %v1665_v47 = vsel %vm1664_vm14, %v1663_v19, %v1635_v41  ;;  %v5347_v48 = vsel %vm1526_vm5, %v5346_v33, %v5345_v42  ;;  %v4109_v49 = vsel %vm1514_vm2, %v4108_v37, %v4107_v36  ;;  %v4119_v57 = vrot.slane %v8360_v60, 4 }
 0x21c   : > { %v5349_v53 = vsel %vm1529_vm7, %v5348_v18, %v5347_v48  ;;  %v4111_v56 = vsel %vm1517_vm3, %v4110_v20, %v4109_v49  ;;  %v5355_v62 = vrot.slane %v8310_v35, 2  ;;  %v5356_v63 = vrot.slane %v8325_v51, 1 }
 0x21d   : > { %v5351_v38 = vsel %vm1532_vm8, %v5350_v27, %v5349_v53  ;;  %v4112_v58 = vsel %vm1520_vm4, %v8315_v43, %v4111_v56  ;;  %v5359_v40 = vrot.slane %v8318_v45, 7  ;;  %v5361_v1 = vrot.slane %v8357_v9, 6 }
 0x21e   : > { %v1652_v0 = vpop.permute.xlu0 %1651  ;;  %5352 = vrot.lane.b32.xlu1 %v5351_v38, %s7404_s16  ;;  %v4114_v54 = vsel %vm1523_vm6, %v4113_v24, %v4112_v58  ;;  %v5363_v26 = vrot.slane %v8375_v15, 5  ;;  %v5365_v2 = vrot.slane %v8349_v11, 4  ;;  %v5357_v7 = vsel %vm1514_vm2, %v5356_v63, %v5355_v62 }
 0x21f   : > { %v1667_v4 = vsel %vm1666_vm15, %v1665_v47, %v1652_v0  ;;  %v4116_v5 = vsel %vm1526_vm5, %v4115_v46, %v4114_v54  ;;  %v5367_v8 = vrot.slane %v8367_v14, 3  ;;  %v5358_v34 = vsel %vm1517_vm3, %v8303_v25, %v5357_v7 }
 0x220   : > { %1669 = vst.msk [vmem:[%s8414_s25] sm:$0xff] %vm1668_vm0, %v1667_v4  ;;  %v4118_v30 = vsel %vm1529_vm7, %v4117_v52, %v4116_v5  ;;  %v4124_v16 = vrot.slane %v8307_v32, 4  ;;  %v4125_v61 = vrot.slane %v8322_v50, 3  ;;  %v5360_v10 = vsel %vm1520_vm4, %v5359_v40, %v5358_v34 }
 0x221   : > { %v4120_v44 = vsel %vm1532_vm8, %v4119_v57, %v4118_v30  ;;  %v4127_v59 = vrot.slane %v8298_v3, 2  ;;  %v4129_v29 = vrot.slane %v8315_v43, 1  ;;  %v5362_v12 = vsel %vm1523_vm6, %v5361_v1, %v5360_v10 }
 0x222   : > { %4121 = vrot.lane.b32.xlu0 %v4120_v44, %s7405_s17  ;;  %v4126_v33 = vsel %vm1514_vm2, %v4125_v61, %v4124_v16  ;;  %v4132_v39 = vrot.slane %v8372_v22, 7  ;;  %v4134_v13 = vrot.slane %v8344_v6, 6  ;;  %v5364_v17 = vsel %vm1526_vm5, %v5363_v26, %v5362_v12 }
 0x223   : > { %v4128_v18 = vsel %vm1517_vm3, %v4127_v59, %v4126_v33  ;;  %v4136_v19 = vrot.slane %v8360_v60, 5  ;;  %v5372_v21 = vrot.slane %v8310_v35, 3  ;;  %v5366_v23 = vsel %vm1529_vm7, %v5365_v2, %v5364_v17 }
 0x224   : > { %v4130_v27 = vsel %vm1520_vm4, %v4129_v29, %v4128_v18  ;;  %v5373_v28 = vrot.slane %v8325_v51, 2  ;;  %v5375_v31 = vrot.slane %v8303_v25, 1  ;;  %v5368_v36 = vsel %vm1532_vm8, %v5367_v8, %v5366_v23 }
 0x225   : > { %v4131_v37 = vsel %vm1523_vm6, %v8352_v55, %v4130_v27  ;;  %v5378_v41 = vrot.slane %v8357_v9, 7  ;;  %v5380_v42 = vrot.slane %v8375_v15, 6  ;;  %5369 = vrot.lane.b32.xlu1 %v5368_v36, %s7403_s9  ;;  %v5382_v46 = vrot.slane %v8349_v11, 5  ;;  %s7409_s9 = smov [#allocation2]  }
 0x226   : > { %v4133_v20 = vsel %vm1526_vm5, %v4132_v39, %v4131_v37  ;;  %v5374_v24 = vsel %vm1514_vm2, %v5373_v28, %v5372_v21  ;;  %v5384_v47 = vrot.slane %v8367_v14, 4  ;;  %v4158_v52 = vrot.slane %v8307_v32, 6 }
 0x227   : > { %v4135_v48 = vsel %vm1529_vm7, %v4134_v13, %v4133_v20  ;;  %v5376_v49 = vsel %vm1517_vm3, %v5375_v31, %v5374_v24  ;;  %v4159_v53 = vrot.slane %v8322_v50, 5  ;;  %v4161_v62 = vrot.slane %v8298_v3, 4 }
 0x228   : > { %v4137_v56 = vsel %vm1532_vm8, %v4136_v19, %v4135_v48  ;;  %v5377_v57 = vsel %vm1520_vm4, %v8318_v45, %v5376_v49  ;;  %v4163_v38 = vrot.slane %v8315_v43, 3  ;;  %v4165_v40 = vrot.slane %v8352_v55, 2 }
 0x229   : > { %4138 = vrot.lane.b32.xlu0 %v4137_v56, %s7406_s24  ;;  %v5379_v58 = vsel %vm1523_vm6, %v5378_v41, %v5377_v57  ;;  %v4160_v63 = vsel %vm1514_vm2, %v4159_v53, %v4158_v52  ;;  %v4167_v0 = vrot.slane %v8372_v22, 1  ;;  %v4170_v26 = vrot.slane %v8360_v60, 7 }
 0x22a   : > { %v5381_v54 = vsel %vm1526_vm5, %v5380_v42, %v5379_v58  ;;  %v4162_v1 = vsel %vm1517_vm3, %v4161_v62, %v4160_v63  ;;  %v5389_v2 = vrot.slane %v8310_v35, 4  ;;  %v5390_v7 = vrot.slane %v8325_v51, 3 }
 0x22b   : > { %v5383_v4 = vsel %vm1529_vm7, %v5382_v46, %v5381_v54  ;;  %v4164_v5 = vsel %vm1520_vm4, %v4163_v38, %v4162_v1  ;;  %v5392_v8 = vrot.slane %v8303_v25, 2  ;;  %v5394_v16 = vrot.slane %v8318_v45, 1 }
 0x22c   : > { %v5385_v30 = vsel %vm1532_vm8, %v5384_v47, %v5383_v4  ;;  %v4166_v34 = vsel %vm1523_vm6, %v4165_v40, %v4164_v5  ;;  %v5397_v61 = vrot.slane %v8375_v15, 7  ;;  %v5391_v10 = vsel %vm1514_vm2, %v5390_v7, %v5389_v2 }
 0x22d   : > { %5386 = vrot.lane.b32.xlu1 %v5385_v30, %s7405_s17  ;;  %v4168_v44 = vsel %vm1526_vm5, %v4167_v0, %v4166_v34  ;;  %v5399_v59 = vrot.slane %v8349_v11, 6  ;;  %v5401_v29 = vrot.slane %v8367_v14, 5  ;;  %v5393_v33 = vsel %vm1517_vm3, %v5392_v8, %v5391_v10  ;;  %s7326_s17 = sshll.u32 %s7409_s9, 4  ;;  %s7327_s17 = int_to_ptr.vmem [resolvable:$false] %s7326_s17 }
 0x22e   : > { %v4169_v12 = vsel %vm1529_vm7, %v8344_v6, %v4168_v44  ;;  %v4175_v39 = vrot.slane %v8307_v32, 7  ;;  %v4176_v13 = vrot.slane %v8322_v50, 6  ;;  %v5395_v18 = vsel %vm1520_vm4, %v5394_v16, %v5393_v33  ;;  %p7329_p1 = scmp.lt.s32.totalorder %s8638_s10, %s7327_s17 }
 0x22f   : > { %v4171_v17 = vsel %vm1532_vm8, %v4170_v26, %v4169_v12  ;;  %v4178_v19 = vrot.slane %v8298_v3, 5  ;;  %v4180_v21 = vrot.slane %v8315_v43, 4  ;;  %v5396_v23 = vsel %vm1523_vm6, %v8357_v9, %v5395_v18 }
 0x230   : > { %4172 = vrot.lane.b32.xlu0 %v4171_v17, %s7407_s27  ;;  %v4177_v27 = vsel %vm1514_vm2, %v4176_v13, %v4175_v39  ;;  %v4182_v28 = vrot.slane %v8352_v55, 3  ;;  %v4184_v31 = vrot.slane %v8372_v22, 2  ;;  %v5398_v36 = vsel %vm1526_vm5, %v5397_v61, %v5396_v23 }
 0x231   : > { %v4179_v37 = vsel %vm1517_vm3, %v4178_v19, %v4177_v27  ;;  %v4186_v41 = vrot.slane %v8344_v6, 1  ;;  %v5423_v42 = vrot.slane %v8310_v35, 6  ;;  %v5400_v20 = vsel %vm1529_vm7, %v5399_v59, %v5398_v36 }
 0x232   : > { %v4181_v24 = vsel %vm1520_vm4, %v4180_v21, %v4179_v37  ;;  %v5424_v46 = vrot.slane %v8325_v51, 5  ;;  %v5426_v47 = vrot.slane %v8303_v25, 4  ;;  %v5402_v48 = vsel %vm1532_vm8, %v5401_v29, %v5400_v20 }
 0x233   : > { %v4183_v49 = vsel %vm1523_vm6, %v4182_v28, %v4181_v24  ;;  %v5428_v52 = vrot.slane %v8318_v45, 3  ;;  %v5430_v53 = vrot.slane %v8357_v9, 2  ;;  %5403 = vrot.lane.b32.xlu1 %v5402_v48, %s7406_s24  ;;  %v5432_v62 = vrot.slane %v8375_v15, 1  ;;  %s7328_s24 = scalar_lea.vmem %s7327_s17, 1024 }
 0x234   : > { %v4185_v56 = vsel %vm1526_vm5, %v4184_v31, %v4183_v49  ;;  %v5425_v57 = vsel %vm1514_vm2, %v5424_v46, %v5423_v42  ;;  %v5435_v38 = vrot.slane %v8367_v14, 7  ;;  %v5440_v40 = vrot.slane %v8310_v35, 7  ;;  %p7330_p2 = scmp.lt.s32.totalorder %s7328_s24, %s7322_s15 }
 0x235   : > { %v4187_v58 = vsel %vm1529_vm7, %v4186_v41, %v4185_v56  ;;  %v5427_v63 = vsel %vm1517_vm3, %v5426_v47, %v5425_v57  ;;  %v5441_v0 = vrot.slane %v8325_v51, 6  ;;  %v5443_v26 = vrot.slane %v8303_v25, 5 }
 0x236   : > { %v4188_v54 = vsel %vm1532_vm8, %v8360_v60, %v4187_v58  ;;  %v5429_v1 = vsel %vm1520_vm4, %v5428_v52, %v5427_v63  ;;  %v5445_v2 = vrot.slane %v8318_v45, 4  ;;  %v5447_v7 = vrot.slane %v8357_v9, 3  ;;  %p7331_p3 = por %p7330_p2, %p7329_p1 }
 0x237   : > { %4189 = vrot.lane.b32.xlu0 %v4188_v54, %s7408_s29  ;;  %v5431_v4 = vsel %vm1523_vm6, %v5430_v53, %v5429_v1  ;;  %v5442_v5 = vsel %vm1514_vm2, %v5441_v0, %v5440_v40  ;;  %v5449_v8 = vrot.slane %v8375_v15, 2  ;;  %v5451_v16 = vrot.slane %v8349_v11, 1 }
 0x238   : > { %v5433_v30 = vsel %vm1526_vm5, %v5432_v62, %v5431_v4  ;;  %v5444_v34 = vsel %vm1517_vm3, %v5443_v26, %v5442_v5  ;;  %v4058_v61 = vrot.slane %v8322_v50, 7  ;;  %v4060_v59 = vrot.slane %v8298_v3, 6  ;;  %p7332_p5 = pnand %p7331_p3, %p7325_p0 }
 0x239   : > { %v5434_v44 = vsel %vm1529_vm7, %v8349_v11, %v5433_v30  ;;  %v5446_v10 = vsel %vm1520_vm4, %v5445_v2, %v5444_v34  ;;  %v4062_v29 = vrot.slane %v8315_v43, 5  ;;  %v4064_v13 = vrot.slane %v8352_v55, 4 }
 0x23a   : > { %v5436_v12 = vsel %vm1532_vm8, %v5435_v38, %v5434_v44  ;;  %v5448_v33 = vsel %vm1523_vm6, %v5447_v7, %v5446_v10  ;;  %v4059_v39 = vsel %vm1514_vm2, %v4058_v61, %v8307_v32  ;;  %v4068_v18 = vrot.slane %v8344_v6, 2 }
 0x23b   : > { %5437 = vrot.lane.b32.xlu1 %v5436_v12, %s7407_s27  ;;  %v5450_v50 = vsel %vm1526_vm5, %v5449_v8, %v5448_v33  ;;  %v4061_v17 = vsel %vm1517_vm3, %v4060_v59, %v4059_v39  ;;  %v4070_v3 = vrot.slane %v8360_v60, 1  ;;  %v4066_v21 = vrot.slane %v8372_v22, 3 }
 0x23c   : > { %v5452_v43 = vsel %vm1529_vm7, %v5451_v16, %v5450_v50  ;;  %v4063_v19 = vsel %vm1520_vm4, %v4062_v29, %v4061_v17  ;;  %v5323_v32 = vrot.slane %v8325_v51, 7  ;;  %v5325_v27 = vrot.slane %v8303_v25, 6 }
 0x23d   : > { %v5453_v55 = vsel %vm1532_vm8, %v8367_v14, %v5452_v43  ;;  %v4065_v23 = vsel %vm1523_vm6, %v4064_v13, %v4063_v19  ;;  %v5327_v28 = vrot.slane %v8318_v45, 5  ;;  %v5329_v31 = vrot.slane %v8357_v9, 4 }
 0x23e   : > { %v4067_v6 = vsel %vm1526_vm5, %v4066_v21, %v4065_v23  ;;  %v5324_v60 = vsel %vm1514_vm2, %v5323_v32, %v8310_v35  ;;  %v5331_v22 = vrot.slane %v8375_v15, 3  ;;  %v5333_v41 = vrot.slane %v8349_v11, 2 }
 0x23f   : > { %5454 = vrot.lane.b32.xlu1 %v5453_v55, %s7408_s29  ;;  %v4069_v51 = vsel %vm1529_vm7, %v4068_v18, %v4067_v6  ;;  %v5326_v36 = vsel %vm1517_vm3, %v5325_v27, %v5324_v60  ;;  %v5335_v9 = vrot.slane %v8367_v14, 1 }
 0x240   : > { %v4071_v37 = vsel %vm1532_vm8, %v4070_v3, %v4069_v51  ;;  %v5328_v25 = vsel %vm1520_vm4, %v5327_v28, %v5326_v36 }
 0x241   : > { %v5330_v45 = vsel %vm1523_vm6, %v5329_v31, %v5328_v25 }
 0x242   : > { %v5332_v35 = vsel %vm1526_vm5, %v5331_v22, %v5330_v45 }
 0x243   : > { %v5334_v15 = vsel %vm1529_vm7, %v5333_v41, %v5332_v35 }
 0x244   : > { %v5336_v42 = vsel %vm1532_vm8, %v5335_v9, %v5334_v15 }
 0x284   : > { %v4156_v24 = vpop.permute.xlu0 %4155 }
 0x285   : > { %v5421_v20 = vpop.permute.xlu1 %5420 }
 0x289   : > { %v4088_v46 = vpop.permute.xlu1 %4087 }
 0x28a   : > { %v4192_v11 = vsel %vm1654_vm9, %v4071_v37, %v4088_v46 }
 0x28b   : > { %v4105_v47 = vpop.permute.xlu0 %4104 }
 0x28c   : > { %v4193_v57 = vsel %vm1656_vm10, %v4192_v11, %v4105_v47 }
 0x290   : > { %v5353_v48 = vpop.permute.xlu1 %5352 }
 0x291   : > { %v5457_v54 = vsel %vm1654_vm9, %v5336_v42, %v5353_v48 }
 0x294   : > { %v4122_v49 = vpop.permute.xlu0 %4121 }
 0x295   : > { %v4194_v62 = vsel %vm1658_vm11, %v4193_v57, %v4122_v49 }
 0x297   : > { %v5370_v52 = vpop.permute.xlu1 %5369 }
 0x298   : > { %v5458_v26 = vsel %vm1656_vm10, %v5457_v54, %v5370_v52 }
 0x29b   : > { %v4139_v53 = vpop.permute.xlu0 %4138 }
 0x29c   : > { %v4195_v38 = vsel %vm1660_vm12, %v4194_v62, %v4139_v53 }
 0x29d   : > { %v4196_v63 = vsel %vm1662_vm13, %v4195_v38, %v4156_v24 }
 0x29f   : > { %v5387_v56 = vpop.permute.xlu1 %5386 }
 0x2a0   : > { %v5459_v2 = vsel %vm1658_vm11, %v5458_v26, %v5387_v56 }
 0x2a2   : > { %v4173_v14 = vpop.permute.xlu0 %4172 }
 0x2a3   : > { %v4197_v40 = vsel %vm1664_vm14, %v4196_v63, %v4173_v14 }
 0x2a5   : > { %v5404_v58 = vpop.permute.xlu1 %5403 }
 0x2a6   : > { %v5460_v4 = vsel %vm1660_vm12, %v5459_v2, %v5404_v58 }
 0x2a7   : > { %v5461_v7 = vsel %vm1662_vm13, %v5460_v4, %v5421_v20 }
 0x2a9   : > { %v4190_v0 = vpop.permute.xlu0 %4189 }
 0x2aa   : > { %v4198_v1 = vsel %vm1666_vm15, %v4197_v40, %v4190_v0 }
 0x2ab   : > { %6078 = vst.msk [vmem:[%s8414_s25 + $0x10] sm:$0xff] %vm1668_vm0, %v4198_v1 }
 0x2ad   : > { %v5438_v5 = vpop.permute.xlu1 %5437 }
 0x2ae   : > { %v5462_v8 = vsel %vm1664_vm14, %v5461_v7, %v5438_v5 }
 0x2b1   : > { %v5455_v30 = vpop.permute.xlu1 %5454 }
 0x2b2   : > { %v5463_v34 = vsel %vm1666_vm15, %v5462_v8, %v5455_v30 }
 0x2b3   : > { %6201 = vst.msk [vmem:[%s8414_s25 + $0x18] sm:$0xff] %vm1668_vm0, %v5463_v34 }
 0x2b4   : > { %7335 = shalt.err (!%p7332_p5)
}
 0x2b5   : > { %s7336_s27 = scalar_lea.hbm %s8645_s13, 512  ;;  %s7340_s8 = scalar_lea.hbm %s8704_s5, 1024 }
 0x2b6   : > { %p7337_p6 = scmp.ne.s32.totalorder %s8645_s13, %s7336_s27  ;;  %p7341_p10 = scmp.lt.u32.totalorder %s8645_s13, %s8704_s5 }
 0x2b7   : > { %p7342_p11 = scmp.lt.u32.totalorder %s7340_s8, %s7336_s27  ;;  %p7344_p13 = scmp.lt.u32.totalorder %s7336_s27, %s8645_s13 }
 0x2b8   : > { %p7338_p7 = pnand %p7337_p6, %p7481_p4 }
 0x2b9   : > { %p7343_p12 = por %p7342_p11, %p7341_p10 }
 0x2ba   : > { %p7339_p9 = pneg %p7338_p7 }
 0x2bb   : > { %p7345_p0 = por %p7344_p13, %p7343_p12 }
 0x2bd   : > { %p7346_p1 = pnand %p7345_p0, %p7339_p9 }
 0x2bf   : > { %7349 = shalt.err (!%p7346_p1)
}
 0x2c0   : > { %s7410_s14 = smov 128  }
 0x2c1   : > { %7078 = dma.vmem_to_hbm [thread:$0]  (%p7481_p4), %s8638_s10, 512, %s8645_s13, %s8652_s21, %s7410_s14, %s7410_s14, %s7404_s16  }
 0x2c2 PF: > { %p7085_p2 = scmp.ge.s32.totalorder %s7400_s23, 2  ;;  %s5497_s12 = sand.u32 1, %s7380_s18  }
 0x2c3   : > { %s5498_s15 = scalar_lea.sflag [#allocation3], %s5497_s12 }
 0x2c4   : > { %p7081_p3 = pnand %p7085_p2, %p7488_p8 }
 0x2c6   : > { %7375 = dma.done.wait (!%p7081_p3), %s5498_s15, 512  }
 0x2c7   : > { %7377 = vsyncadd (!%p7081_p3), %s5498_s15, 4294966784  ;;  %s18_s23 = sadd.s32 1, %s7400_s23   ;;  %s8707_s18 = smov %s7384_s19 }
 0x2c8   : > { %p15_p5 = scmp.ge.s32.totalorder %s18_s23, 4   ;;  %s8708_s19 = smov %s7388_s20 }
 0x2c9   : > { %s8709_s20 = smov %s7494_s6  ;;  %s8710_s21 = smov %s7396_s22 }
 0x2ca   : > { %s8711_s22 = smov %s8713_s26  ;;  %17 = sbr.rel (!%p15_p5) target bundleno = 4 (0x4), region = 95 }
 0x2d1   :  { %5503 = vsyncpa [#allocation3], 1 }
 0x2d2   :  { %5505 = vsyncpa [#allocation3 + $0x1], 1 }

</bundles_post_ra>
